<compile_context>
chip_gen: v5e
topology: v5e:2x2
jax: 0.10.0
libtpu: 0.0.40
codegen_flags: <defaults>
</compile_context>

<pallas_src>
import functools

import jax
import jax.numpy as jnp
from jax.experimental import pallas as pl
from jax.experimental.pallas import tpu as pltpu


def _round_up(x, m):
    return (x + m - 1) // m * m


# ----------------------------------------------------------------------------
# Pallas kernel: fused MLM-head matmul + SPLADE max aggregation
# ----------------------------------------------------------------------------
def splade_head_kernel(hid_ref, w_ref, b_ref, mask_ref, out_ref, acc_ref, *,
                       tile_s, rows_per_dot):
    """One (batch-block, vocab-tile) grid step.

    hid_ref : (BB, S_pad, H)  bf16  hidden states for BB batch rows
    w_ref   : (H, TV)         bf16  vocab-projection weight tile
    b_ref   : (1, TV)         f32   vocab-projection bias tile
    mask_ref: (BB, S_pad, 1)  bf16  attention mask (0/1); padded rows/batch = 0
    out_ref : (BB, TV)        f32   SPLADE scores for this (batch, vocab) tile
    acc_ref : (BB, TV)        f32   VMEM scratch holding per-row running maxima
    """
    bb, s_pad, h_dim = hid_ref.shape
    tv = w_ref.shape[1]
    rg = rows_per_dot
    n_groups = bb // rg
    n_chunks = s_pad // tile_s

    w = w_ref[...]          # (H, TV) bf16, hoisted
    bias = b_ref[...]       # (1, TV) f32, hoisted

    # log1p is monotone non-decreasing and the mask is in {0, 1}, so
    #   max_s[ mask_s * log1p(relu(x_s)) ] == log1p(max(0, max_s mask_s * x_s)).
    # The 0-init of the running max plays the role of relu; log1p runs once on
    # the reduced (BB, TV) maximum, and only a (rg*tile_s, TV) f32 logits slab
    # is ever live (rg*tile_s ~= 512 -> ~4 MiB at TV=2048).
    # NOTE: this commutation requires a {0,1}-valued mask (same as the PyTorch
    # reference's padding mask); fractional masks would need per-position log1p.
    for g in range(n_groups):                       # static unroll over row groups
        row0 = g * rg

        def body(c, acc):
            off = pl.multiple_of(c * tile_s, tile_s)
            hblk = hid_ref[pl.ds(row0, rg), pl.ds(off, tile_s), :]   # (rg, ts, H) bf16
            mblk = mask_ref[pl.ds(row0, rg), pl.ds(off, tile_s), :]  # (rg, ts, 1) bf16
            logits = jnp.dot(hblk.reshape(rg * tile_s, h_dim), w,
                             preferred_element_type=jnp.float32) + bias
            z = logits.reshape(rg, tile_s, tv) * mblk.astype(jnp.float32)
            return jnp.maximum(acc, jnp.max(z, axis=1))              # (rg, TV)

        acc = jax.lax.fori_loop(0, n_chunks, body,
                                jnp.zeros((rg, tv), jnp.float32))

        if n_groups == 1:
            out_ref[...] = jnp.log1p(acc)           # single unmasked block store
        else:
            acc_ref[pl.ds(row0, rg), :] = acc       # cheap VMEM scratch write

    if n_groups > 1:
        # One EUP log1p pass + one unmasked (BB, TV) store per grid step.
        out_ref[...] = jnp.log1p(acc_ref[...])


def splade_forward(hidden, w_vocab, b_vocab, attention_mask, *,
                   block_b=8, tile_v=2048, tile_s=512):
    """SPLADE forward over precomputed hidden states.

    hidden:         (B, S, H) float
    w_vocab:        (H, V)    float
    b_vocab:        (V,)      float
    attention_mask: (B, S)    int or float (0/1 padding mask)
    returns:        (B, V)    float32

    Defaults are sized for v7x's 64 MiB VMEM (footprint ~28 MiB < 48 MiB limit).
    On v5e/v6e (128 MiB VMEM): tile_v=4096, block_b=16 and
    vmem_limit_bytes ~ 100 MiB reduce grid steps and weight HBM traffic further.
    """
    B, S, H = hidden.shape
    V = w_vocab.shape[1]

    # Clamp tile sizes to the (padded) problem so small shapes still work.
    tile_v = min(tile_v, _round_up(V, 128))
    tile_s = min(tile_s, _round_up(S, 8))

    B_pad = _round_up(B, block_b)      # pad batch instead of shrinking block_b
    S_pad = _round_up(S, tile_s)
    V_pad = _round_up(V, tile_v)

    # Fuse rows into each MXU dot so M = rows_per_dot * tile_s ~= 512 LHS rows
    # per weight-tile push, while keeping the f32 logits slab ~4 MiB.
    rows_per_dot = max(1, min(block_b, 512 // tile_s))
    while block_b % rows_per_dot:
        rows_per_dot -= 1

    # bf16 operands for the MXU; f32 accumulation happens inside the kernel.
    hid = hidden.astype(jnp.bfloat16)
    w = w_vocab.astype(jnp.bfloat16)
    mask_b = attention_mask.astype(jnp.bfloat16).reshape(B, S, 1)
    bias2d = b_vocab.astype(jnp.float32).reshape(1, V)

    if (B_pad, S_pad) != (B, S):       # padded rows/batch: mask 0 -> contribute 0
        hid = jnp.pad(hid, ((0, B_pad - B), (0, S_pad - S), (0, 0)))
        mask_b = jnp.pad(mask_b, ((0, B_pad - B), (0, S_pad - S), (0, 0)))
    if V_pad != V:                     # padded vocab columns sliced off below
        w = jnp.pad(w, ((0, 0), (0, V_pad - V)))
        bias2d = jnp.pad(bias2d, ((0, 0), (0, V_pad - V)))

    grid = (B_pad // block_b, V_pad // tile_v)

    cost = pl.CostEstimate(
        flops=int(2 * B_pad * S_pad * H * V_pad),
        transcendentals=int(B_pad * V_pad),
        bytes_accessed=int(grid[0] * H * V_pad * 2      # W streamed per batch block
                           + B_pad * S_pad * H * 2      # hidden (bf16)
                           + B_pad * S_pad * 2          # mask (bf16)
                           + B_pad * V_pad * 4          # output
                           + grid[0] * V_pad * 4))      # bias

    kernel = functools.partial(splade_head_kernel,
                               tile_s=tile_s, rows_per_dot=rows_per_dot)

    out = pl.pallas_call(
        kernel,
        out_shape=jax.ShapeDtypeStruct((B_pad, V_pad), jnp.float32),
        grid_spec=pltpu.PrefetchScalarGridSpec(
            num_scalar_prefetch=0,
            grid=grid,
            in_specs=[
                pl.BlockSpec((block_b, S_pad, H), lambda b, j: (b, 0, 0)),  # hidden
                pl.BlockSpec((H, tile_v),         lambda b, j: (0, j)),     # W_vocab
                pl.BlockSpec((1, tile_v),         lambda b, j: (0, j)),     # bias
                pl.BlockSpec((block_b, S_pad, 1), lambda b, j: (b, 0, 0)),  # mask
            ],
            out_specs=pl.BlockSpec((block_b, tile_v), lambda b, j: (b, j)),
            scratch_shapes=[pltpu.VMEM((block_b, tile_v), jnp.float32)],
        ),
        compiler_params=pltpu.CompilerParams(
            # Vocab axis "parallel" so v7x megacore splits the weight stream,
            # not the batch (batch-split would double chip-level W traffic).
            dimension_semantics=("arbitrary", "parallel"),
            vmem_limit_bytes=48 * 1024 * 1024),
        cost_estimate=cost,
    )(hid, w, bias2d, mask_b)

    return out[:B, :V]


# ----------------------------------------------------------------------------
# Synthetic "transformer" encoder (plain-JAX glue producing hidden states)
# ----------------------------------------------------------------------------
def synthetic_encoder(input_ids, params):
    emb = params["emb"][input_ids]                      # (B, S, H)
    h = jnp.tanh(emb @ params["w_enc"] + params["b_enc"])
    return h.astype(jnp.float32)


def init_params(key, vocab, hidden):
    k1, k2, k3, k4 = jax.random.split(key, 4)
    return {
        "emb":     0.02 * jax.random.normal(k1, (vocab, hidden), jnp.float32),
        "w_enc":   0.05 * jax.random.normal(k2, (hidden, hidden), jnp.float32),
        "b_enc":   jnp.zeros((hidden,), jnp.float32),
        "w_vocab": 0.05 * jax.random.normal(k3, (hidden, vocab), jnp.float32),
        "b_vocab": 0.01 * jax.random.normal(k4, (vocab,), jnp.float32),
    }


def splade_reference(hidden, w_vocab, b_vocab, attention_mask):
    logits = hidden @ w_vocab + b_vocab                         # (B, S, V)
    act = jnp.log1p(jnp.maximum(logits, 0.0))
    masked = act * attention_mask.astype(jnp.float32)[..., None]
    return jnp.max(masked, axis=1)                              # agg == 'max'


if __name__ == "__main__":
    B, S, H, V = 2, 16, 128, 512
    key = jax.random.PRNGKey(0)
    kp, kid = jax.random.split(key)

    params = init_params(kp, V, H)
    input_ids = jax.random.randint(kid, (B, S), 0, V, dtype=jnp.int32)
    attention_mask = jnp.array(
        [[1] * S, [1] * (S - 5) + [0] * 5], dtype=jnp.int32)   # padded 2nd row

    hidden = synthetic_encoder(input_ids, params)

    out = splade_forward(hidden, params["w_vocab"], params["b_vocab"],
                         attention_mask)
    out = jax.block_until_ready(out)

    ref = splade_reference(hidden, params["w_vocab"], params["b_vocab"],
                           attention_mask)

    assert out.shape == (B, V)
    # bf16 MXU operands vs f32 reference -> loose-but-tight-enough tolerance.
    assert jnp.allclose(out, ref, atol=2e-2, rtol=2e-2), "mismatch vs reference"
    print("KERNEL_OK")
</pallas_src>

<mosaic_0001>
module attributes {stable_mosaic.version = 11 : i64} {
  func.func @splade_head_kernel(%arg0: i32, %arg1: i32, %arg2: memref<8x16x128xbf16, #tpu.memory_space<vmem>>, %arg3: memref<128x512xbf16, #tpu.memory_space<vmem>>, %arg4: memref<1x512xf32, #tpu.memory_space<vmem>>, %arg5: memref<8x16x1xbf16, #tpu.memory_space<vmem>>, %arg6: memref<8x512xf32, #tpu.memory_space<vmem>>, %arg7: memref<8x512xf32, #tpu.memory_space<vmem>>) attributes {dimension_semantics = [#tpu.dimension_semantics<arbitrary>, #tpu.dimension_semantics<parallel>], iteration_bounds = array<i64: 1, 1>, scalar_prefetch = 0 : i64, scratch_operands = 1 : i64, tpu.core_type = #tpu.core_type<tc>, window_params = [{transform_indices = @transform_0, window_bounds = array<i64: 8, 16, 128>}, {transform_indices = @transform_1, window_bounds = array<i64: 128, 512>}, {transform_indices = @transform_2, window_bounds = array<i64: 1, 512>}, {transform_indices = @transform_3, window_bounds = array<i64: 8, 16, 1>}, {transform_indices = @transform_4, window_bounds = array<i64: 8, 512>}]} {
    %c0 = arith.constant 0 : index
    %c0_0 = arith.constant 0 : index
    %0 = vector.load %arg3[%c0, %c0_0] : memref<128x512xbf16, #tpu.memory_space<vmem>>, vector<128x512xbf16>
    %c0_1 = arith.constant 0 : index
    %c0_2 = arith.constant 0 : index
    %1 = vector.load %arg4[%c0_1, %c0_2] : memref<1x512xf32, #tpu.memory_space<vmem>>, vector<1x512xf32>
    %cst = arith.constant 0.000000e+00 : f32
    %2 = vector.broadcast %cst : f32 to vector<8x512xf32>
    %c0_i32 = arith.constant 0 : i32
    %c16_i32 = arith.constant 16 : i32
    %3 = arith.muli %c0_i32, %c16_i32 : i32
    %4 = tpu.assume_multiple %3, 16 : i32
    %c0_3 = arith.constant 0 : index
    %5 = arith.index_cast %4 : i32 to index
    %c0_4 = arith.constant 0 : index
    %6 = vector.load %arg2[%c0_3, %5, %c0_4] : memref<8x16x128xbf16, #tpu.memory_space<vmem>>, vector<8x16x128xbf16>
    %c0_5 = arith.constant 0 : index
    %7 = arith.index_cast %4 : i32 to index
    %c0_6 = arith.constant 0 : index
    %8 = vector.load %arg5[%c0_5, %7, %c0_6] : memref<8x16x1xbf16, #tpu.memory_space<vmem>>, vector<8x16x1xbf16>
    %9 = vector.shape_cast %6 : vector<8x16x128xbf16> to vector<128x128xbf16>
    %cst_7 = arith.constant dense<0.000000e+00> : vector<128x512xf32>
    %10 = tpu.matmul %9, %0, %cst_7 {dimension_numbers = #tpu.dot_dimension_numbers<[1], [0], [0], [1], [0, 0, 1, 1], [], []>} : vector<128x128xbf16>, vector<128x512xbf16>, vector<128x512xf32> -> vector<128x512xf32>
    %11 = vector.broadcast %1 : vector<1x512xf32> to vector<128x512xf32>
    %12 = arith.addf %10, %11 : vector<128x512xf32>
    %13 = vector.shape_cast %12 : vector<128x512xf32> to vector<8x16x512xf32>
    %14 = arith.extf %8 : vector<8x16x1xbf16> to vector<8x16x1xf32>
    %15 = vector.broadcast %14 : vector<8x16x1xf32> to vector<8x16x512xf32>
    %16 = arith.mulf %13, %15 : vector<8x16x512xf32>
    %cst_8 = arith.constant dense<0xFF800000> : vector<8x512xf32>
    %17 = vector.multi_reduction <maximumf>, %16, %cst_8 [1] : vector<8x16x512xf32> to vector<8x512xf32>
    %18 = arith.maximumf %2, %17 : vector<8x512xf32>
    %c1_i32 = arith.constant 1 : i32
    %19 = math.log1p %18 : vector<8x512xf32>
    %c0_9 = arith.constant 0 : index
    %c0_10 = arith.constant 0 : index
    %20 = vector.load %arg6[%c0_9, %c0_10] : memref<8x512xf32, #tpu.memory_space<vmem>>, vector<8x512xf32>
    tpu.vector_store %arg6[%c0_9, %c0_10], %19 {strides = array<i32>} : memref<8x512xf32, #tpu.memory_space<vmem>>, vector<8x512xf32>,
    return
  }
  func.func @transform_0(%arg0: i32, %arg1: i32) -> (i32, i32, i32) {
    %c0_i32 = arith.constant 0 : i32
    %c0_i32_0 = arith.constant 0 : i32
    %c0_i32_1 = arith.constant 0 : i32
    return %arg0, %c0_i32, %c0_i32_0 : i32, i32, i32
  }
  func.func @transform_1(%arg0: i32, %arg1: i32) -> (i32, i32) {
    %c0_i32 = arith.constant 0 : i32
    %c0_i32_0 = arith.constant 0 : i32
    return %c0_i32, %arg1 : i32, i32
  }
  func.func @transform_2(%arg0: i32, %arg1: i32) -> (i32, i32) {
    %c0_i32 = arith.constant 0 : i32
    %c0_i32_0 = arith.constant 0 : i32
    return %c0_i32, %arg1 : i32, i32
  }
  func.func @transform_3(%arg0: i32, %arg1: i32) -> (i32, i32, i32) {
    %c0_i32 = arith.constant 0 : i32
    %c0_i32_0 = arith.constant 0 : i32
    %c0_i32_1 = arith.constant 0 : i32
    return %arg0, %c0_i32, %c0_i32_0 : i32, i32, i32
  }
  func.func @transform_4(%arg0: i32, %arg1: i32) -> (i32, i32) {
    %c0_i32 = arith.constant 0 : i32
    return %arg0, %arg1 : i32, i32
  }
}

</mosaic_0001>

<bundles_post_ra>
// kernel: tpu_custom_call.1
= control target key start
LH: loop header
LB: loop body
LE: loop exit
PB: predicated region body
PF: predicated region fallthrough
CT: control target
= control target key end

     0   :  { %9 = vsyncpa [#allocation4], 0  ;;  %s2511_s0 = inlined_call_operand.vmem [shape: bf16[8,16,128], index: 0, kind: input, shape index: {}]   ;;  %s2512_s1 = inlined_call_operand.hbm [shape: bf16[128,512], index: 1, kind: input, shape index: {}]   ;;  %s2513_s2 = inlined_call_operand.vmem [shape: f32[1,512], index: 2, kind: input, shape index: {}]   ;;  %s2514_s3 = inlined_call_operand.vmem [shape: bf16[8,16,1], index: 3, kind: input, shape index: {}]   ;;  %s2515_s4 = inlined_call_operand.hbm [shape: f32[8,512], index: 4, kind: output, shape index: {}]  }
   0x1   :  { %10 = vsyncpa [#allocation5], 0  ;;  %s17_s17 = sshll.u32 %s2512_s1, 4  ;;  %s1711_s18 = smov [#allocation3]   ;;  %s18_s17 = int_to_ptr.hbm [resolvable:$true] %s17_s17 }
   0x2   :  { %s19_s19 = sshll.u32 %s1711_s18, 4  ;;  %s1712_s20 = smov 256   ;;  %s20_s19 = int_to_ptr.vmem [resolvable:$true] %s19_s19 }
   0x3   :  { %s1713_s21 = smov 16  }
   0x4   :  { %25 = dma.hbm_to_vmem [thread:$0]  %s18_s17, 4096, %s20_s19, [#allocation4], %s1712_s20, %s1712_s20, %s1713_s21  }
   0x5   :  { %1707 = dma.done.wait [#allocation4], 4096  }
   0x6   :  { %1708 = vsyncadd [#allocation4], 4294963200  ;;  %v1454_v0 = vld [vmem:[#allocation3 + $0xe0] sm:$0xf]  ;;  %v1498_v1 = vld [vmem:[#allocation3 + $0xec] sm:$0xf0] }
   0x7   :  { %v1496_v2 = vld [vmem:[#allocation3 + $0xe4] sm:$0xf]  ;;  %v1455_v3 = vor.u32 %v1498_v1, %v1454_v0  ;;  %v1456_v4 = vld [vmem:[#allocation3 + $0xf0] sm:$0xf0]  ;;  %v1462_v5 = vld [vmem:[#allocation3 + $0xe8] sm:$0xf] }
   0x8   :  { %v1499_v6 = vld [vmem:[#allocation3 + $0xf4] sm:$0xf0]  ;;  %v1459_v7 = vor.u32 %v1496_v2, %v1456_v4  ;;  %v1497_v9 = vld [vmem:[#allocation3 + $0xec] sm:$0xf]  ;;  %v1464_v10 = vld [vmem:[#allocation3 + $0xf8] sm:$0xf0] }
   0x9   :  { %v1463_v8 = vor.u32 %v1499_v6, %v1462_v5  ;;  %v1438_v11 = vld [vmem:[#allocation3 + $0xc0] sm:$0xf]  ;;  %316 = vmatpush.bf16.msra.mxu0 %v1455_v3  ;;  %v1467_v12 = vor.u32 %v1497_v9, %v1464_v10  ;;  %v1494_v13 = vld [vmem:[#allocation3 + $0xcc] sm:$0xf0]  ;;  %v1492_v14 = vld [vmem:[#allocation3 + $0xc4] sm:$0xf] }
   0xa   :  { %v1440_v15 = vld [vmem:[#allocation3 + $0xd0] sm:$0xf0]  ;;  %365 = vmatpush.bf16.msra.mxu1 %v1459_v7  ;;  %v1439_v16 = vor.u32 %v1494_v13, %v1438_v11  ;;  %v1446_v18 = vld [vmem:[#allocation3 + $0xc8] sm:$0xf]  ;;  %v1495_v19 = vld [vmem:[#allocation3 + $0xd4] sm:$0xf0] }
   0xb   :  { %414 = vmatpush.bf16.msra.mxu2 %v1463_v8  ;;  %v1443_v17 = vor.u32 %v1492_v14, %v1440_v15  ;;  %v1493_v20 = vld [vmem:[#allocation3 + $0xcc] sm:$0xf]  ;;  %463 = vmatpush.bf16.msra.mxu3 %v1467_v12  ;;  %v1447_v21 = vor.u32 %v1495_v19, %v1446_v18  ;;  %v1448_v22 = vld [vmem:[#allocation3 + $0xd8] sm:$0xf0]  ;;  %v1422_v23 = vld [vmem:[#allocation3 + $0xa0] sm:$0xf] }
   0xc   :  { %v1490_v24 = vld [vmem:[#allocation3 + $0xac] sm:$0xf0]  ;;  %v1451_v25 = vor.u32 %v1493_v20, %v1448_v22  ;;  %v1488_v26 = vld [vmem:[#allocation3 + $0xa4] sm:$0xf]  ;;  %v1424_v27 = vld [vmem:[#allocation3 + $0xb0] sm:$0xf0] }
   0xd   :  { %v1430_v28 = vld [vmem:[#allocation3 + $0xa8] sm:$0xf]  ;;  %317 = vmatpush.bf16.msra.mxu0 %v1439_v16  ;;  %v1423_v29 = vor.u32 %v1490_v24, %v1422_v23  ;;  %v1491_v30 = vld [vmem:[#allocation3 + $0xb4] sm:$0xf0]  ;;  %v1489_v31 = vld [vmem:[#allocation3 + $0xac] sm:$0xf]  ;;  %v1427_v33 = vor.u32 %v1488_v26, %v1424_v27 }
   0xe   :  { %v1432_v32 = vld [vmem:[#allocation3 + $0xb8] sm:$0xf0]  ;;  %366 = vmatpush.bf16.msra.mxu1 %v1443_v17  ;;  %v1431_v34 = vor.u32 %v1491_v30, %v1430_v28  ;;  %v1406_v35 = vld [vmem:[#allocation3 + $0x80] sm:$0xf]  ;;  %v1486_v36 = vld [vmem:[#allocation3 + $0x8c] sm:$0xf0] }
   0xf   :  { %415 = vmatpush.bf16.msra.mxu2 %v1447_v21  ;;  %v1484_v37 = vld [vmem:[#allocation3 + $0x84] sm:$0xf]  ;;  %464 = vmatpush.bf16.msra.mxu3 %v1451_v25  ;;  %v1435_v38 = vor.u32 %v1489_v31, %v1432_v32  ;;  %v1408_v39 = vld [vmem:[#allocation3 + $0x90] sm:$0xf0]  ;;  %v1414_v40 = vld [vmem:[#allocation3 + $0x88] sm:$0xf]  ;;  %v1407_v44 = vor.u32 %v1486_v36, %v1406_v35 }
  0x10   :  { %v1487_v41 = vld [vmem:[#allocation3 + $0x94] sm:$0xf0]  ;;  %v1485_v42 = vld [vmem:[#allocation3 + $0x8c] sm:$0xf]  ;;  %v1416_v43 = vld [vmem:[#allocation3 + $0x98] sm:$0xf0]  ;;  %v1411_v45 = vor.u32 %v1484_v37, %v1408_v39 }
  0x11   :  { %318 = vmatpush.bf16.msra.mxu0 %v1423_v29  ;;  %v1415_v46 = vor.u32 %v1487_v41, %v1414_v40  ;;  %v1390_v47 = vld [vmem:[#allocation3 + $0x60] sm:$0xf]  ;;  %v1482_v48 = vld [vmem:[#allocation3 + $0x6c] sm:$0xf0]  ;;  %v1480_v49 = vld [vmem:[#allocation3 + $0x64] sm:$0xf]  ;;  %v1419_v50 = vor.u32 %v1485_v42, %v1416_v43 }
  0x12   :  { %367 = vmatpush.bf16.msra.mxu1 %v1427_v33  ;;  %v1392_v51 = vld [vmem:[#allocation3 + $0x70] sm:$0xf0]  ;;  %v1398_v52 = vld [vmem:[#allocation3 + $0x68] sm:$0xf]  ;;  %v1483_v53 = vld [vmem:[#allocation3 + $0x74] sm:$0xf0]  ;;  %v1391_v56 = vor.u32 %v1482_v48, %v1390_v47 }
  0x13   :  { %416 = vmatpush.bf16.msra.mxu2 %v1431_v34  ;;  %465 = vmatpush.bf16.msra.mxu3 %v1435_v38  ;;  %v1481_v54 = vld [vmem:[#allocation3 + $0x6c] sm:$0xf]  ;;  %v1400_v55 = vld [vmem:[#allocation3 + $0x78] sm:$0xf0]  ;;  %v1395_v57 = vor.u32 %v1480_v49, %v1392_v51  ;;  %v1399_v58 = vor.u32 %v1483_v53, %v1398_v52  ;;  %v1374_v59 = vld [vmem:[#allocation3 + $0x40] sm:$0xf] }
  0x14   :  { %v1478_v60 = vld [vmem:[#allocation3 + $0x4c] sm:$0xf0]  ;;  %v1476_v61 = vld [vmem:[#allocation3 + $0x44] sm:$0xf]  ;;  %v1403_v62 = vor.u32 %v1481_v54, %v1400_v55  ;;  %v1376_v63 = vld [vmem:[#allocation3 + $0x50] sm:$0xf0] }
  0x15   :  { %319 = vmatpush.bf16.msra.mxu0 %v1407_v44  ;;  %v1382_v0 = vld [vmem:[#allocation3 + $0x48] sm:$0xf]  ;;  %v1479_v1 = vld [vmem:[#allocation3 + $0x54] sm:$0xf0]  ;;  %v1477_v2 = vld [vmem:[#allocation3 + $0x4c] sm:$0xf]  ;;  %v1375_v4 = vor.u32 %v1478_v60, %v1374_v59  ;;  %v1379_v6 = vor.u32 %v1476_v61, %v1376_v63 }
  0x16   :  { %368 = vmatpush.bf16.msra.mxu1 %v1411_v45  ;;  %v1384_v3 = vld [vmem:[#allocation3 + $0x58] sm:$0xf0]  ;;  %v1358_v5 = vld [vmem:[#allocation3 + $0x20] sm:$0xf]  ;;  %v1383_v7 = vor.u32 %v1479_v1, %v1382_v0  ;;  %v1474_v8 = vld [vmem:[#allocation3 + $0x2c] sm:$0xf0] }
  0x17   :  { %417 = vmatpush.bf16.msra.mxu2 %v1415_v46  ;;  %466 = vmatpush.bf16.msra.mxu3 %v1419_v50  ;;  %v1472_v9 = vld [vmem:[#allocation3 + $0x24] sm:$0xf]  ;;  %v1360_v10 = vld [vmem:[#allocation3 + $0x30] sm:$0xf0]  ;;  %v1387_v11 = vor.u32 %v1477_v2, %v1384_v3  ;;  %v1366_v12 = vld [vmem:[#allocation3 + $0x28] sm:$0xf]  ;;  %v1359_v18 = vor.u32 %v1474_v8, %v1358_v5 }
  0x18   :  { %v1475_v13 = vld [vmem:[#allocation3 + $0x34] sm:$0xf0]  ;;  %v1473_v14 = vld [vmem:[#allocation3 + $0x2c] sm:$0xf]  ;;  %v1368_v15 = vld [vmem:[#allocation3 + $0x38] sm:$0xf0]  ;;  %v1363_v21 = vor.u32 %v1472_v9, %v1360_v10 }
  0x19   :  { %320 = vmatpush.bf16.msra.mxu0 %v1391_v56  ;;  %v1714_v16 = vmov 0   ;;  %v1509_v17 = vld [vmem:[%s2514_s3] sm:$0xff]   ;;  %v1367_v22 = vor.u32 %v1475_v13, %v1366_v12  ;;  %v1470_v24 = vld [vmem:[#allocation3 + $0xc] sm:$0xf0]  ;;  %v1371_v26 = vor.u32 %v1473_v14, %v1368_v15  ;;  %v1344_v27 = vld [vmem:[#allocation3 + $0x10] sm:$0xf0] }
  0x1a   :  { %369 = vmatpush.bf16.msra.mxu1 %v1395_v57  ;;  %1552 = vset.pattern.permute.xlu0 %v1714_v16  ;;  %v1510_v19 = vunpack.c.l.bf16 %v1509_v17  ;;  %v1511_v20 = vunpack.c.h.bf16 %v1509_v17  ;;  %v1342_v23 = vld [vmem:[#allocation3] sm:$0xf]  ;;  %v1468_v25 = vld [vmem:[#allocation3 + $0x4] sm:$0xf]  ;;  %v1350_v28 = vld [vmem:[#allocation3 + $0x8] sm:$0xf] }
  0x1b   :  { %418 = vmatpush.bf16.msra.mxu2 %v1399_v58  ;;  %467 = vmatpush.bf16.msra.mxu3 %v1403_v62  ;;  %v1471_v29 = vld [vmem:[#allocation3 + $0x14] sm:$0xf0]  ;;  %v1469_v31 = vld [vmem:[#allocation3 + $0xc] sm:$0xf]  ;;  %v1352_v32 = vld [vmem:[#allocation3 + $0x18] sm:$0xf0]  ;;  %v1343_v33 = vor.u32 %v1470_v24, %v1342_v23  ;;  %v1347_v34 = vor.u32 %v1468_v25, %v1344_v27 }
  0x1c   :  { %1563 = vset.pattern.permute.xlu1 %v1714_v16  ;;  %1574 = vset.pattern.permute.xlu2 %v1714_v16  ;;  %v1553_v30 = vpack.i.bf16 %v1511_v20, %v1510_v19  ;;  %v1351_v35 = vor.u32 %v1471_v29, %v1350_v28  ;;  %v1355_v36 = vor.u32 %v1469_v31, %v1352_v32  ;;  %v1500_v37 = vld [vmem:[%s2511_s0] sm:$0xff]  ;;  %v1540_v38 = vld [vmem:[%s2514_s3 + $0x8] sm:$0xff]   ;;  %v1541_v43 = vld [vmem:[%s2514_s3 + $0x10] sm:$0xff]   ;;  %vm1248_vm2 = vcmask 1041409   ;;  %s1298_s29 = sshll.u32 %s2515_s4, 4  ;;  %s1299_s29 = int_to_ptr.hbm [resolvable:$true] %s1298_s29 }
  0x1d   :  { %321 = vmatpush.bf16.msra.mxu0 %v1375_v4  ;;  %v1514_v39 = vunpack.c.l.bf16 %v1540_v38  ;;  %v1515_v40 = vunpack.c.h.bf16 %v1540_v38  ;;  %v1501_v42 = vld [vmem:[%s2511_s0 + $0x8] sm:$0xff]  ;;  %v1518_v44 = vunpack.c.l.bf16 %v1541_v43  ;;  %v1519_v45 = vunpack.c.h.bf16 %v1541_v43  ;;  %v1502_v47 = vld [vmem:[%s2511_s0 + $0x10] sm:$0xff]  ;;  %v1542_v48 = vld [vmem:[%s2514_s3 + $0x18] sm:$0xff]  }
  0x1e   :  { %370 = vmatpush.bf16.msra.mxu1 %v1379_v6  ;;  %1554 = vperm.xlu0 %1552, %v1553_v30   ;;  %v1522_v49 = vunpack.c.l.bf16 %v1542_v48  ;;  %v1523_v50 = vunpack.c.h.bf16 %v1542_v48  ;;  %v1503_v52 = vld [vmem:[%s2511_s0 + $0x18] sm:$0xff]  ;;  %v1504_v53 = vld [vmem:[%s2511_s0 + $0x20] sm:$0xff]  ;;  %v1505_v58 = vld [vmem:[%s2511_s0 + $0x28] sm:$0xff] }
  0x1f   :  { %419 = vmatpush.bf16.msra.mxu2 %v1383_v7  ;;  %468 = vmatpush.bf16.msra.mxu3 %v1387_v11  ;;  %v1558_v41 = vpack.i.bf16 %v1515_v40, %v1514_v39  ;;  %v1564_v46 = vpack.i.bf16 %v1519_v45, %v1518_v44  ;;  %v1543_v54 = vld [vmem:[%s2514_s3 + $0x20] sm:$0xff]   ;;  %v1545_v59 = vld [vmem:[%s2514_s3 + $0x30] sm:$0xff]   ;;  %v1544_v63 = vld [vmem:[%s2514_s3 + $0x28] sm:$0xff]  }
  0x20   :  { %v1569_v51 = vpack.i.bf16 %v1523_v50, %v1522_v49  ;;  %v1526_v55 = vunpack.c.l.bf16 %v1543_v54  ;;  %v1527_v56 = vunpack.c.h.bf16 %v1543_v54  ;;  %v1534_v60 = vunpack.c.l.bf16 %v1545_v59  ;;  %v1546_v0 = vld [vmem:[%s2514_s3 + $0x38] sm:$0xff]   ;;  %v1506_v7 = vld [vmem:[%s2511_s0 + $0x30] sm:$0xff]  ;;  %v66_v9 = vld [vmem:[%s2513_s2] sm:$0xf] }
  0x21   :  { %322 = vmatpush.bf16.msra.mxu0 %v1359_v18  ;;  %1565 = vperm.xlu1 %1563, %v1564_v46   ;;  %v1535_v61 = vunpack.c.h.bf16 %v1545_v59  ;;  %v1530_v1 = vunpack.c.l.bf16 %v1544_v63  ;;  %v1531_v2 = vunpack.c.h.bf16 %v1544_v63  ;;  %v1538_v3 = vunpack.c.l.bf16 %v1546_v0  ;;  %v1507_v8 = vld [vmem:[%s2511_s0 + $0x38] sm:$0xff]  ;;  %s1715_s0 = smov [#allocation6]  }
  0x22   :  { %371 = vmatpush.bf16.msra.mxu1 %v1363_v21  ;;  %v1575_v57 = vpack.i.bf16 %v1527_v56, %v1526_v55  ;;  %v1539_v4 = vunpack.c.h.bf16 %v1546_v0  ;;  %v1795_v12 = vperm.slane %v66_v9, 0  ;;  %v1797_v13 = vperm.slane %v66_v9, 1  ;;  %s1296_s2 = sshll.u32 %s1715_s0, 4  ;;  %s1297_s2 = int_to_ptr.vmem [resolvable:$true] %s1296_s2 }
  0x23   :  { %420 = vmatpush.bf16.msra.mxu2 %v1367_v22  ;;  %469 = vmatpush.bf16.msra.mxu3 %v1371_v26  ;;  %v1585_v62 = vpack.i.bf16 %v1535_v61, %v1534_v60  ;;  %v1580_v5 = vpack.i.bf16 %v1531_v2, %v1530_v1  ;;  %v1802_v24 = vperm.slane %v66_v9, 2  ;;  %v1805_v26 = vperm.slane %v66_v9, 3 }
  0x24   :  { %1576 = vperm.xlu2 %1574, %v1575_v57   ;;  %v1590_v6 = vpack.i.bf16 %v1539_v4, %v1538_v3 }
  0x25   :  { %323 = vmatpush.bf16.msra.mxu0 %v1343_v33 }
  0x26   :  { %372 = vmatpush.bf16.msra.mxu1 %v1347_v34  ;;  %1559 = vperm.xlu0 %1552, %v1558_v41  }
  0x27   :  { %421 = vmatpush.bf16.msra.mxu2 %v1351_v35  ;;  %470 = vmatpush.bf16.msra.mxu3 %v1355_v36 }
  0x28   :  { %324 = vmatmul.bf16.vlgmr.msra.gmra.mxu0 %v1500_v37 }
  0x29   :  { %373 = vmatmul.bf16.vlgmr.msra.gmra.mxu1 %v1500_v37  ;;  %1570 = vperm.xlu1 %1563, %v1569_v51  }
  0x2a   :  { %422 = vmatmul.bf16.vlgmr.msra.gmra.mxu2 %v1500_v37  ;;  %471 = vmatmul.bf16.vlgmr.msra.gmra.mxu3 %v1500_v37 }
  0x2c   :  { %1581 = vperm.xlu2 %1574, %v1580_v5  }
  0x2e   :  { %1586 = vperm.xlu0 %1552, %v1585_v62  }
  0x31   :  { %1591 = vperm.xlu1 %1563, %v1590_v6  }
  0x38   :  { %329 = vmatmul.bf16.gmra.mxu0 %v1501_v42 }
  0x39   :  { %378 = vmatmul.bf16.gmra.mxu1 %v1501_v42 }
  0x3a   :  { %427 = vmatmul.bf16.gmra.mxu2 %v1501_v42  ;;  %476 = vmatmul.bf16.gmra.mxu3 %v1501_v42 }
  0x48   :  { %334 = vmatmul.bf16.gmra.mxu0 %v1502_v47 }
  0x49   :  { %383 = vmatmul.bf16.gmra.mxu1 %v1502_v47 }
  0x4a   :  { %432 = vmatmul.bf16.gmra.mxu2 %v1502_v47  ;;  %481 = vmatmul.bf16.gmra.mxu3 %v1502_v47 }
  0x58   :  { %339 = vmatmul.bf16.gmra.mxu0 %v1503_v52 }
  0x59   :  { %388 = vmatmul.bf16.gmra.mxu1 %v1503_v52 }
  0x5a   :  { %437 = vmatmul.bf16.gmra.mxu2 %v1503_v52  ;;  %486 = vmatmul.bf16.gmra.mxu3 %v1503_v52 }
  0x68   :  { %344 = vmatmul.bf16.gmra.mxu0 %v1504_v53 }
  0x69   :  { %393 = vmatmul.bf16.gmra.mxu1 %v1504_v53 }
  0x6a   :  { %442 = vmatmul.bf16.gmra.mxu2 %v1504_v53  ;;  %491 = vmatmul.bf16.gmra.mxu3 %v1504_v53 }
  0x78   :  { %349 = vmatmul.bf16.gmra.mxu0 %v1505_v58 }
  0x79   :  { %398 = vmatmul.bf16.gmra.mxu1 %v1505_v58 }
  0x7a   :  { %447 = vmatmul.bf16.gmra.mxu2 %v1505_v58  ;;  %496 = vmatmul.bf16.gmra.mxu3 %v1505_v58 }
  0x88   :  { %354 = vmatmul.bf16.gmra.mxu0 %v1506_v7 }
  0x89   :  { %403 = vmatmul.bf16.gmra.mxu1 %v1506_v7 }
  0x8a   :  { %452 = vmatmul.bf16.gmra.mxu2 %v1506_v7  ;;  %501 = vmatmul.bf16.gmra.mxu3 %v1506_v7 }
  0x90   :  { %v1555_v14 = vpop.permute.xlu0 %1554 }
  0x91   :  { %v1557_v16 = vunpack.i.h.bf16 %v1555_v14  ;;  %v1556_v17 = vunpack.i.l.bf16 %v1555_v14 }
  0x98   :  { %359 = vmatmul.bf16.gmra.mxu0 %v1507_v8  ;;  %v1560_v54 = vpop.permute.xlu0 %1559 }
  0x99   :  { %408 = vmatmul.bf16.gmra.mxu1 %v1507_v8  ;;  %v1811_v62 = vunpack.i.h.bf16 %v1560_v54  ;;  %v1561_v63 = vunpack.i.l.bf16 %v1560_v54 }
  0x9a   :  { %457 = vmatmul.bf16.gmra.mxu2 %v1507_v8  ;;  %506 = vmatmul.bf16.gmra.mxu3 %v1507_v8 }
  0xa5   :  { %v325_v10 = vpop.f32.mrf.mxu0 }
  0xa6   :  { %v374_v11 = vpop.f32.mrf.mxu1  ;;  %v326_v15 = vadd.f32 %v325_v10, %v1795_v12 }
  0xa7   :  { %v375_v19 = vadd.f32 %v374_v11, %v1797_v13 }
  0xa8   :  { %v608_v27 = vmul.f32 %v1556_v17, %v326_v15 }
  0xa9   :  { %v609_v29 = vmul.f32 %v1556_v17, %v375_v19 }
  0xad   :  { %v423_v18 = vpop.f32.mrf.mxu2  ;;  %v472_v20 = vpop.f32.mrf.mxu3 }
  0xae   :  { %v327_v21 = vpop.f32.mrf.mxu0  ;;  %v376_v23 = vpop.f32.mrf.mxu1  ;;  %v424_v32 = vadd.f32 %v423_v18, %v1802_v24  ;;  %v473_v34 = vadd.f32 %v472_v20, %v1805_v26 }
  0xaf   :  { %v328_v22 = vadd.f32 %v327_v21, %v1795_v12  ;;  %v377_v25 = vadd.f32 %v376_v23, %v1797_v13 }
  0xb0   :  { %v610_v44 = vmul.f32 %v1556_v17, %v424_v32  ;;  %v611_v47 = vmul.f32 %v1556_v17, %v473_v34 }
  0xb1   :  { %v612_v28 = vmul.f32 %v1557_v16, %v328_v22  ;;  %v613_v30 = vmul.f32 %v1557_v16, %v377_v25 }
  0xb3   :  { %v672_v31 = vmax.f32 %v608_v27, %v612_v28  ;;  %v679_v33 = vmax.f32 %v609_v29, %v613_v30  ;;  %v1566_v27 = vpop.permute.xlu1 %1565 }
  0xb5   :  { %v673_v35 = vrot.slane %v672_v31, 4  ;;  %v425_v36 = vpop.f32.mrf.mxu2  ;;  %v680_v37 = vrot.slane %v679_v33, 4  ;;  %v474_v39 = vpop.f32.mrf.mxu3 }
  0xb6   :  { %v426_v38 = vadd.f32 %v425_v36, %v1802_v24  ;;  %v330_v40 = vpop.f32.mrf.mxu0  ;;  %v475_v42 = vadd.f32 %v474_v39, %v1805_v26  ;;  %v379_v43 = vpop.f32.mrf.mxu1  ;;  %v1821_v39 = vunpack.i.l.bf16 %v1566_v27 }
  0xb7   :  { %v674_v41 = vmax.f32 %v672_v31, %v673_v35  ;;  %v681_v45 = vmax.f32 %v679_v33, %v680_v37  ;;  %v331_v4 = vadd.f32 %v330_v40, %v1795_v12  ;;  %v380_v14 = vadd.f32 %v379_v43, %v1797_v13 }
  0xb8   :  { %v614_v46 = vmul.f32 %v1557_v16, %v426_v38  ;;  %v615_v49 = vmul.f32 %v1557_v16, %v475_v42 }
  0xb9   :  { %v675_v48 = vrot.slane %v674_v41, 2  ;;  %v682_v50 = vrot.slane %v681_v45, 2  ;;  %v616_v19 = vmul.f32 %v1561_v63, %v331_v4  ;;  %v617_v30 = vmul.f32 %v1561_v63, %v380_v14 }
  0xba   :  { %v686_v51 = vmax.f32 %v610_v44, %v614_v46  ;;  %v693_v53 = vmax.f32 %v611_v47, %v615_v49  ;;  %v1827_v49 = vunpack.i.h.bf16 %v1566_v27 }
  0xbb   :  { %v676_v52 = vmax.f32 %v674_v41, %v675_v48  ;;  %v683_v55 = vmax.f32 %v681_v45, %v682_v50 }
  0xbc   :  { %v687_v56 = vrot.slane %v686_v51, 4  ;;  %v694_v58 = vrot.slane %v693_v53, 4 }
  0xbd   :  { %v677_v57 = vrot.slane %v676_v52, 1  ;;  %v428_v59 = vpop.f32.mrf.mxu2  ;;  %v684_v60 = vrot.slane %v683_v55, 1  ;;  %v477_v0 = vpop.f32.mrf.mxu3 }
  0xbe   :  { %v688_v61 = vmax.f32 %v686_v51, %v687_v56  ;;  %v332_v1 = vpop.f32.mrf.mxu0  ;;  %v695_v3 = vmax.f32 %v693_v53, %v694_v58  ;;  %v381_v6 = vpop.f32.mrf.mxu1  ;;  %v429_v33 = vadd.f32 %v428_v59, %v1802_v24  ;;  %v478_v34 = vadd.f32 %v477_v0, %v1805_v26 }
  0xbf   :  { %v678_v2 = vmax.f32 %v676_v52, %v677_v57  ;;  %v333_v5 = vadd.f32 %v332_v1, %v1795_v12  ;;  %v685_v7 = vmax.f32 %v683_v55, %v684_v60  ;;  %v382_v9 = vadd.f32 %v381_v6, %v1797_v13 }
  0xc0   :  { %v689_v8 = vrot.slane %v688_v61, 2  ;;  %v696_v11 = vrot.slane %v695_v3, 2  ;;  %v618_v51 = vmul.f32 %v1561_v63, %v429_v33  ;;  %v619_v52 = vmul.f32 %v1561_v63, %v478_v34 }
  0xc1   :  { %v896_v10 = vmax.f32 %v678_v2, 0.0  ;;  %v897_v15 = vmax.f32 %v685_v7, 0.0  ;;  %v620_v20 = vmul.f32 %v1811_v62, %v333_v5  ;;  %v621_v25 = vmul.f32 %v1811_v62, %v382_v9 }
  0xc2   :  { %v690_v16 = vmax.f32 %v688_v61, %v689_v8  ;;  %v697_v18 = vmax.f32 %v695_v3, %v696_v11 }
  0xc3   :  { %v928_v17 = vadd.f32 1.0, %v896_v10  ;;  %v931_v21 = vmul.f32 -0.5, %v896_v10  ;;  %v937_v22 = vadd.f32 1.0, %v897_v15  ;;  %v940_v28 = vmul.f32 -0.5, %v897_v15 }
  0xc4   :  { %v691_v23 = vrot.slane %v690_v16, 1  ;;  %v698_v29 = vrot.slane %v697_v18, 1  ;;  %v934_v36 = vand.u32 2147483647, %v896_v10  ;;  %v700_v38 = vmax.f32 %v616_v19, %v620_v20 }
  0xc5   :  { %1595 = vlog2.f32 %v928_v17  ;;  %v430_v31 = vpop.f32.mrf.mxu2  ;;  %v932_v40 = vadd.f32 1.0, %v931_v21  ;;  %v943_v41 = vand.u32 2147483647, %v897_v15  ;;  %v707_v43 = vmax.f32 %v617_v30, %v621_v25  ;;  %v479_v44 = vpop.f32.mrf.mxu3 }
  0xc6   :  { %1597 = vlog2.f32 %v937_v22  ;;  %v692_v32 = vmax.f32 %v690_v16, %v691_v23  ;;  %v335_v35 = vpop.f32.mrf.mxu0  ;;  %v699_v37 = vmax.f32 %v697_v18, %v698_v29  ;;  %v384_v45 = vpop.f32.mrf.mxu1  ;;  %v941_v46 = vadd.f32 1.0, %v940_v28 }
  0xc7   :  { %v701_v48 = vrot.slane %v700_v38, 4  ;;  %v708_v53 = vrot.slane %v707_v43, 4  ;;  %v431_v57 = vadd.f32 %v430_v31, %v1802_v24  ;;  %v480_v58 = vadd.f32 %v479_v44, %v1805_v26 }
  0xc8   :  { %v1823_v42 = vmax.f32 %v692_v32, 0.0  ;;  %v1825_v47 = vmax.f32 %v699_v37, 0.0  ;;  %v1833_v60 = vmul.f32 %v932_v40, %v896_v10  ;;  %vm1835_vm0 = vcmp.lt.f32.partialorder %v934_v36, 0.0004427343 }
  0xc9   :  { %v702_v56 = vmax.f32 %v700_v38, %v701_v48  ;;  %vm1839_vm1 = vcmp.lt.f32.partialorder %v943_v41, 0.0004427343  ;;  %v1844_v1 = vmul.f32 %v941_v46, %v897_v15  ;;  %v336_v4 = vadd.f32 %v335_v35, %v1795_v12 }
  0xca   :  { %v949_v50 = vmul.f32 -0.5, %v1823_v42  ;;  %v946_v55 = vadd.f32 1.0, %v1823_v42  ;;  %v955_v63 = vadd.f32 1.0, %v1825_v47  ;;  %v952_v2 = vand.u32 2147483647, %v1823_v42 }
  0xcb   :  { %v1596_v54 = vpop.eup %1595  ;;  %v958_v3 = vmul.f32 -0.5, %v1825_v47  ;;  %v703_v7 = vrot.slane %v702_v56, 2  ;;  %v709_v8 = vmax.f32 %v707_v43, %v708_v53  ;;  %v622_v11 = vmul.f32 %v1811_v62, %v431_v57 }
  0xcc   :  { %v1598_v59 = vpop.eup %1597  ;;  %v1849_v5 = vmul.f32 0.6931472, %v1596_v54  ;;  %v950_v6 = vadd.f32 1.0, %v949_v50  ;;  %1599 = vlog2.f32 %v946_v55  ;;  %v623_v14 = vmul.f32 %v1811_v62, %v480_v58 }
  0xcd   :  { %v1851_v10 = vmul.f32 0.6931472, %v1598_v59  ;;  %v433_v15 = vpop.f32.mrf.mxu2  ;;  %1601 = vlog2.f32 %v955_v63  ;;  %v961_v16 = vand.u32 2147483647, %v1825_v47  ;;  %v704_v17 = vmax.f32 %v702_v56, %v703_v7  ;;  %v482_v28 = vpop.f32.mrf.mxu3 }
  0xce   :  { %v337_v9 = vpop.f32.mrf.mxu0  ;;  %v710_v18 = vrot.slane %v709_v8, 2  ;;  %v959_v19 = vadd.f32 1.0, %v958_v3  ;;  %v714_v20 = vmax.f32 %v618_v51, %v622_v11  ;;  %v721_v21 = vmax.f32 %v619_v52, %v623_v14  ;;  %v386_v29 = vpop.f32.mrf.mxu1 }
  0xcf   :  { %v338_v22 = vadd.f32 %v337_v9, %v1795_v12  ;;  %v936_v23 = vsel %vm1835_vm0, %v1833_v60, %v1849_v5  ;;  %v1862_v25 = vmul.f32 %v950_v6, %v1823_v42  ;;  %v705_v62 = vrot.slane %v704_v17, 1 }
  0xd0   :  { %v711_v27 = vmax.f32 %v709_v8, %v710_v18  ;;  %v945_v30 = vsel %vm1839_vm1, %v1844_v1, %v1851_v10  ;;  %v715_v31 = vrot.slane %v714_v20, 4  ;;  %v722_v32 = vrot.slane %v721_v21, 4 }
  0xd1   :  { %v385_v33 = vadd.f32 %v384_v45, %v1797_v13  ;;  %v706_v34 = vmax.f32 %v704_v17, %v705_v62  ;;  %v624_v36 = vmul.f32 %v1821_v39, %v336_v4  ;;  %v628_v37 = vmul.f32 %v1827_v49, %v338_v22 }
  0xd2   :  { %v712_v35 = vrot.slane %v711_v27, 1  ;;  %v1600_v38 = vpop.eup %1599  ;;  %v1872_v40 = vmul.f32 %v959_v19, %v1825_v47  ;;  %v716_v41 = vmax.f32 %v714_v20, %v715_v31  ;;  %v723_v43 = vmax.f32 %v721_v21, %v722_v32 }
  0xd3   :  { %v387_v44 = vadd.f32 %v386_v29, %v1797_v13  ;;  %v1602_v46 = vpop.eup %1601  ;;  %v900_v48 = vmax.f32 %v706_v34, 0.0  ;;  %v434_v51 = vadd.f32 %v433_v15, %v1802_v24  ;;  %v728_v45 = vmax.f32 %v624_v36, %v628_v37 }
  0xd4   :  { %v713_v50 = vmax.f32 %v711_v27, %v712_v35  ;;  %v717_v52 = vrot.slane %v716_v41, 2  ;;  %v724_v53 = vrot.slane %v723_v43, 2  ;;  %v625_v54 = vmul.f32 %v1821_v39, %v385_v33 }
  0xd5   :  { %v629_v55 = vmul.f32 %v1827_v49, %v387_v44  ;;  %v964_v56 = vadd.f32 1.0, %v900_v48  ;;  %v967_v57 = vmul.f32 -0.5, %v900_v48  ;;  %v483_v59 = vadd.f32 %v482_v28, %v1805_v26  ;;  %v435_v7 = vpop.f32.mrf.mxu2  ;;  %v484_v22 = vpop.f32.mrf.mxu3 }
  0xd6   :  { %v901_v58 = vmax.f32 %v713_v50, 0.0  ;;  %v718_v63 = vmax.f32 %v716_v41, %v717_v52  ;;  %v725_v3 = vmax.f32 %v723_v43, %v724_v53  ;;  %v729_v4 = vrot.slane %v728_v45, 4  ;;  %v340_v37 = vpop.f32.mrf.mxu0  ;;  %v389_v52 = vpop.f32.mrf.mxu1 }
  0xd7   :  { %v735_v6 = vmax.f32 %v625_v54, %v629_v55  ;;  %v1879_v8 = vmul.f32 0.6931472, %v1600_v38  ;;  %1603 = vlog2.f32 %v964_v56  ;;  %v626_v11 = vmul.f32 %v1821_v39, %v434_v51 }
  0xd8   :  { %v973_v9 = vadd.f32 1.0, %v901_v58  ;;  %v970_v14 = vand.u32 2147483647, %v900_v48  ;;  %v976_v15 = vmul.f32 -0.5, %v901_v58  ;;  %v719_v17 = vrot.slane %v718_v63, 1 }
  0xd9   :  { %v726_v18 = vrot.slane %v725_v3, 1  ;;  %v968_v19 = vadd.f32 1.0, %v967_v57  ;;  %v730_v20 = vmax.f32 %v728_v45, %v729_v4  ;;  %v736_v21 = vrot.slane %v735_v6, 4 }
  0xda   :  { %1605 = vlog2.f32 %v973_v9  ;;  %v977_v62 = vadd.f32 1.0, %v976_v15  ;;  %v720_v27 = vmax.f32 %v718_v63, %v719_v17  ;;  %v627_v29 = vmul.f32 %v1821_v39, %v483_v59 }
  0xdb   :  { %v727_v28 = vmax.f32 %v725_v3, %v726_v18  ;;  %vm1885_vm3 = vcmp.lt.f32.partialorder %v952_v2, 0.0004427343  ;;  %v1889_v32 = vmul.f32 0.6931472, %v1602_v46  ;;  %vm1893_vm4 = vcmp.lt.f32.partialorder %v961_v16, 0.0004427343 }
  0xdc   :  { %v731_v34 = vrot.slane %v730_v20, 2  ;;  %v737_v35 = vmax.f32 %v735_v6, %v736_v21  ;;  %v436_v36 = vadd.f32 %v435_v7, %v1802_v24  ;;  %vm1898_vm5 = vcmp.lt.f32.partialorder %v970_v14, 0.0004427343 }
  0xdd   :  { %v902_v42 = vmax.f32 %v720_v27, 0.0  ;;  %v903_v2 = vmax.f32 %v727_v28, 0.0  ;;  %v485_v38 = vadd.f32 %v484_v22, %v1805_v26  ;;  %v1604_v41 = vpop.eup %1603  ;;  %v969_v43 = vmul.f32 %v968_v19, %v900_v48  ;;  %v1571_v19 = vpop.permute.xlu1 %1570 }
  0xde   :  { %v978_v47 = vmul.f32 %v977_v62, %v901_v58  ;;  %v979_v16 = vand.u32 2147483647, %v901_v58  ;;  %v732_v44 = vmax.f32 %v730_v20, %v731_v34  ;;  %v966_v46 = vmul.f32 0.6931472, %v1604_v41  ;;  %v438_v58 = vpop.f32.mrf.mxu2  ;;  %v342_v20 = vpop.f32.mrf.mxu0 }
  0xdf   :  { %v982_v50 = vadd.f32 1.0, %v902_v42  ;;  %v985_v51 = vmul.f32 -0.5, %v902_v42  ;;  %v738_v45 = vrot.slane %v737_v35, 2  ;;  %v991_v54 = vadd.f32 1.0, %v903_v2 }
  0xe0   :  { %v1606_v53 = vpop.eup %1605  ;;  %v994_v55 = vmul.f32 -0.5, %v903_v2  ;;  %v733_v56 = vrot.slane %v732_v44, 1  ;;  %v630_v57 = vmul.f32 %v1827_v49, %v436_v36  ;;  %v972_v59 = vsel %vm1898_vm5, %v969_v43, %v966_v46  ;;  %v391_v36 = vpop.f32.mrf.mxu1 }
  0xe1   :  { %v975_v63 = vmul.f32 0.6931472, %v1606_v53  ;;  %1607 = vlog2.f32 %v982_v50  ;;  %v631_v48 = vmul.f32 %v1827_v49, %v485_v38  ;;  %v1913_v3 = vsel %vm1248_vm2, %v972_v59, %v936_v23  ;;  %v487_v23 = vpop.f32.mrf.mxu3 }
  0xe2   :  { %vm980_vm6 = vcmp.lt.f32.partialorder %v979_v16, 0.0004427343  ;;  %v988_v4 = vand.u32 2147483647, %v902_v42  ;;  %1609 = vlog2.f32 %v991_v54  ;;  %v986_v7 = vadd.f32 1.0, %v985_v51 }
  0xe3   :  { %v981_v6 = vsel %vm980_vm6, %v978_v47, %v975_v63  ;;  %v997_v9 = vand.u32 2147483647, %v903_v2  ;;  %v734_v14 = vmax.f32 %v732_v44, %v733_v56  ;;  %v995_v61 = vadd.f32 1.0, %v994_v55 }
  0xe4   :  { %v1921_v49 = vsel %vm1248_vm2, %v981_v6, %v945_v30  ;;  %v739_v60 = vmax.f32 %v737_v35, %v738_v45  ;;  %v742_v5 = vmax.f32 %v626_v11, %v630_v57  ;;  %v954_v15 = vsel %vm1885_vm3, %v1862_v25, %v1879_v8 }
  0xe5   :  { %2550 = vst [vmem:[#allocation9_spill] sm:$0xff] %v1921_v49  ;;  %v963_v0 = vsel %vm1893_vm4, %v1872_v40, %v1889_v32  ;;  %v1931_v17 = vmax.f32 %v734_v14, 0.0  ;;  %v749_v1 = vmax.f32 %v627_v29, %v631_v48  ;;  %vm1933_vm7 = vcmp.lt.f32.partialorder %v988_v4, 0.0004427343 }
  0xe6   :  { %v740_v30 = vrot.slane %v739_v60, 1  ;;  %v743_v11 = vrot.slane %v742_v5, 4  ;;  %v341_v18 = vadd.f32 %v340_v37, %v1795_v12  ;;  %v987_v25 = vmul.f32 %v986_v7, %v902_v42  ;;  %v440_v47 = vpop.f32.mrf.mxu2 }
  0xe7   :  { %v1608_v21 = vpop.eup %1607  ;;  %vm1938_vm8 = vcmp.lt.f32.partialorder %v997_v9, 0.0004427343  ;;  %v1000_v40 = vadd.f32 1.0, %v1931_v17  ;;  %v750_v22 = vrot.slane %v749_v1, 4  ;;  %v996_v28 = vmul.f32 %v995_v61, %v903_v2  ;;  %v345_v9 = vpop.f32.mrf.mxu0 }
  0xe8   :  { %v1610_v62 = vpop.eup %1609  ;;  %v984_v27 = vmul.f32 0.6931472, %v1608_v21  ;;  %v741_v29 = vmax.f32 %v739_v60, %v740_v30  ;;  %v744_v31 = vmax.f32 %v742_v5, %v743_v11  ;;  %v1003_v33 = vmul.f32 -0.5, %v1931_v17 }
  0xe9   :  { %v993_v32 = vmul.f32 0.6931472, %v1610_v62  ;;  %v1572_v34 = vunpack.i.l.bf16 %v1571_v19  ;;  %v439_v35 = vadd.f32 %v438_v58, %v1802_v24  ;;  %v751_v38 = vmax.f32 %v749_v1, %v750_v22  ;;  %v489_v59 = vpop.f32.mrf.mxu3 }
  0xea   :  { %v990_v37 = vsel %vm1933_vm7, %v987_v25, %v984_v27  ;;  %v905_v39 = vmax.f32 %v741_v29, 0.0  ;;  %v745_v42 = vrot.slane %v744_v31, 2  ;;  %1611 = vlog2.f32 %v1000_v40 }
  0xeb   :  { %v1948_v41 = vsel %vm1248_vm2, %v990_v37, %v954_v15  ;;  %v999_v2 = vsel %vm1938_vm8, %v996_v28, %v993_v32  ;;  %v1573_v43 = vunpack.i.h.bf16 %v1571_v19  ;;  %v390_v46 = vadd.f32 %v389_v52, %v1797_v13 }
  0xec   :  { %2555 = vst [vmem:[#allocation10_spill] sm:$0xff] %v1948_v41  ;;  %v1953_v16 = vsel %vm1248_vm2, %v999_v2, %v963_v0  ;;  %v1009_v44 = vadd.f32 1.0, %v905_v39  ;;  %v1006_v50 = vand.u32 2147483647, %v1931_v17  ;;  %v746_v51 = vmax.f32 %v744_v31, %v745_v42 }
  0xed   :  { %2556 = vst [vmem:[#allocation11_spill] sm:$0xff] %v1953_v16  ;;  %v752_v45 = vrot.slane %v751_v38, 2  ;;  %v343_v53 = vadd.f32 %v342_v20, %v1795_v12  ;;  %v1004_v54 = vadd.f32 1.0, %v1003_v33  ;;  %v1012_v55 = vmul.f32 -0.5, %v905_v39 }
  0xee   :  { %v634_v56 = vmul.f32 %v1572_v34, %v439_v35  ;;  %v632_v57 = vmul.f32 %v1572_v34, %v341_v18  ;;  %v747_v63 = vrot.slane %v746_v51, 1  ;;  %v392_v4 = vadd.f32 %v391_v36, %v1797_v13  ;;  %v443_v62 = vpop.f32.mrf.mxu2 }
  0xef   :  { %v753_v48 = vmax.f32 %v751_v38, %v752_v45  ;;  %v636_v58 = vmul.f32 %v1573_v43, %v343_v53  ;;  %1613 = vlog2.f32 %v1009_v44  ;;  %v488_v6 = vadd.f32 %v487_v23, %v1805_v26  ;;  %v394_v23 = vpop.f32.mrf.mxu1  ;;  %v347_v53 = vpop.f32.mrf.mxu0 }
  0xf0   :  { %v633_v52 = vmul.f32 %v1572_v34, %v390_v46  ;;  %v441_v7 = vadd.f32 %v440_v47, %v1802_v24  ;;  %v1612_v14 = vpop.eup %1611  ;;  %v748_v61 = vmax.f32 %v746_v51, %v747_v63  ;;  %v637_v15 = vmul.f32 %v1573_v43, %v392_v4 }
  0xf1   :  { %v754_v60 = vrot.slane %v753_v48, 1  ;;  %v756_v5 = vmax.f32 %v632_v57, %v636_v58  ;;  %v1013_v0 = vadd.f32 1.0, %v1012_v55  ;;  %v1015_v1 = vand.u32 2147483647, %v905_v39  ;;  %v492_v47 = vpop.f32.mrf.mxu3 }
  0xf2   :  { %v638_v10 = vmul.f32 %v1573_v43, %v441_v7  ;;  %v490_v30 = vadd.f32 %v489_v59, %v1805_v26  ;;  %v1962_v11 = vmax.f32 %v748_v61, 0.0  ;;  %v763_v20 = vmax.f32 %v633_v52, %v637_v15 }
  0xf3   :  { %v755_v18 = vmax.f32 %v753_v48, %v754_v60  ;;  %v757_v19 = vrot.slane %v756_v5, 4  ;;  %v1964_v21 = vmul.f32 0.6931472, %v1612_v14  ;;  %v1967_v8 = vmul.f32 %v1004_v54, %v1931_v17 }
  0xf4   :  { %v770_v25 = vmax.f32 %v634_v56, %v638_v10  ;;  %v1018_v40 = vadd.f32 1.0, %v1962_v11  ;;  %v639_v22 = vmul.f32 %v1573_v43, %v490_v30  ;;  %v764_v31 = vrot.slane %v763_v20, 4  ;;  %v1577_v43 = vpop.permute.xlu2 %1576 }
  0xf5   :  { %v1614_v27 = vpop.eup %1613  ;;  %v1970_v28 = vmax.f32 %v755_v18, 0.0  ;;  %v758_v29 = vmax.f32 %v756_v5, %v757_v19  ;;  %vm1972_vm9 = vcmp.lt.f32.partialorder %v1006_v50, 0.0004427343  ;;  %v1976_v35 = vmul.f32 %v1013_v0, %v905_v39 }
  0xf6   :  { %v771_v32 = vrot.slane %v770_v25, 4  ;;  %vm1978_vm10 = vcmp.lt.f32.partialorder %v1015_v1, 0.0004427343  ;;  %v2560_v36 = vmov 0  ;;  %v635_v17 = vmul.f32 %v1572_v34, %v488_v6  ;;  %v445_v10 = vpop.f32.mrf.mxu2 }
  0xf7   :  { %2559 = vst [vmem:[#allocation12_spill] sm:$0xff] %v1976_v35  ;;  %v2561_v36 = vsel %vm1978_vm10, 4294967295, %v2560_v36  ;;  %v1027_v42 = vadd.f32 1.0, %v1970_v28  ;;  %v759_v38 = vrot.slane %v758_v29, 2  ;;  %v346_v2 = vadd.f32 %v345_v9, %v1795_v12  ;;  %v396_v7 = vpop.f32.mrf.mxu1 }
  0xf8   :  { %2562 = vst [vmem:[#allocation13_spill] sm:$0xff] %v2561_v36  ;;  %v765_v44 = vmax.f32 %v763_v20, %v764_v31  ;;  %v772_v39 = vmax.f32 %v770_v25, %v771_v32  ;;  %v777_v46 = vmax.f32 %v635_v17, %v639_v22  ;;  %v1988_v50 = vunpack.i.h.bf16 %v1577_v43 }
  0xf9   :  { %v1990_v51 = vmul.f32 0.6931472, %v1614_v27  ;;  %1615 = vlog2.f32 %v1018_v40  ;;  %v1021_v34 = vmul.f32 -0.5, %v1962_v11  ;;  %v760_v45 = vmax.f32 %v758_v29, %v759_v38  ;;  %v494_v38 = vpop.f32.mrf.mxu3 }
  0xfa   :  { %1617 = vlog2.f32 %v1027_v42  ;;  %v766_v54 = vrot.slane %v765_v44, 2  ;;  %v773_v55 = vrot.slane %v772_v39, 2  ;;  %v778_v56 = vrot.slane %v777_v46, 4 }
  0xfb   :  { %2563 = vst [vmem:[#allocation14_spill] sm:$0xff] %v1990_v51  ;;  %v1024_v57 = vand.u32 2147483647, %v1962_v11  ;;  %v1030_v59 = vmul.f32 -0.5, %v1970_v28  ;;  %v761_v63 = vrot.slane %v760_v45, 1  ;;  %v1578_v48 = vunpack.i.l.bf16 %v1577_v43 }
  0xfc   :  { %v767_v58 = vmax.f32 %v765_v44, %v766_v54  ;;  %v774_v4 = vmax.f32 %v772_v39, %v773_v55  ;;  %v779_v6 = vmax.f32 %v777_v46, %v778_v56  ;;  %v348_v52 = vadd.f32 %v347_v53, %v1795_v12 }
  0xfd   :  { %v1033_v14 = vand.u32 2147483647, %v1970_v28  ;;  %v762_v61 = vmax.f32 %v760_v45, %v761_v63  ;;  %v395_v60 = vadd.f32 %v394_v23, %v1797_v13  ;;  %v1022_v5 = vadd.f32 1.0, %v1021_v34 }
  0xfe   :  { %v768_v15 = vrot.slane %v767_v58, 1  ;;  %v775_v0 = vrot.slane %v774_v4, 1  ;;  %v780_v1 = vrot.slane %v779_v6, 2  ;;  %vm2002_vm11 = vcmp.lt.f32.partialorder %v1024_v57, 0.0004427343 }
  0xff   :  { %v1616_v30 = vpop.eup %1615  ;;  %v2564_v18 = vmov 0  ;;  %v2006_v19 = vmax.f32 %v762_v61, 0.0  ;;  %v640_v20 = vmul.f32 %v1578_v48, %v346_v2  ;;  %v644_v25 = vmul.f32 %v1988_v50, %v348_v52 }
 0x100   :  { %v2565_v18 = vsel %vm2002_vm11, 4294967295, %v2564_v18  ;;  %v1618_v40 = vpop.eup %1617  ;;  %v1031_v22 = vadd.f32 1.0, %v1030_v59  ;;  %v769_v27 = vmax.f32 %v767_v58, %v768_v15  ;;  %v776_v29 = vmax.f32 %v774_v4, %v775_v0  ;;  %v350_v4 = vpop.f32.mrf.mxu0 }
 0x101   :  { %2566 = vst [vmem:[#allocation15_spill] sm:$0xff] %v2565_v18  ;;  %v781_v23 = vmax.f32 %v779_v6, %v780_v1  ;;  %vm2009_vm12 = vcmp.lt.f32.partialorder %v1033_v14, 0.0004427343  ;;  %v2567_v31 = vmov 0  ;;  %v1036_v32 = vadd.f32 1.0, %v2006_v19  ;;  %v399_v6 = vpop.f32.mrf.mxu1  ;;  %v448_v1 = vpop.f32.mrf.mxu2 }
 0x102   :  { %v2568_v31 = vsel %vm2009_vm12, 4294967295, %v2567_v31  ;;  %v444_v17 = vadd.f32 %v443_v62, %v1802_v24  ;;  %v784_v42 = vmax.f32 %v640_v20, %v644_v25  ;;  %v909_v43 = vmax.f32 %v769_v27, 0.0 }
 0x103   :  { %2569 = vst [vmem:[#allocation16_spill] sm:$0xff] %v2568_v31  ;;  %v2015_v44 = vmax.f32 %v776_v29, 0.0  ;;  %v782_v2 = vrot.slane %v781_v23, 1  ;;  %v493_v39 = vadd.f32 %v492_v47, %v1805_v26  ;;  %v2018_v46 = vmul.f32 0.6931472, %v1616_v30 }
 0x104   :  { %v2021_v34 = vmul.f32 %v1022_v5, %v1962_v11  ;;  %v2023_v45 = vmul.f32 0.6931472, %v1618_v40  ;;  %v785_v53 = vrot.slane %v784_v42, 4  ;;  %v2026_v54 = vmul.f32 %v1031_v22, %v1970_v28  ;;  %v2634_v22 = vld [vmem:[#allocation9_spill] sm:$0xff] }
 0x105   :  { %2570 = vst [vmem:[#allocation17_spill] sm:$0xff] %v2018_v46  ;;  %1619 = vlog2.f32 %v1036_v32  ;;  %v1045_v62 = vadd.f32 1.0, %v909_v43  ;;  %v397_v55 = vadd.f32 %v396_v7, %v1797_v13  ;;  %v1039_v56 = vmul.f32 -0.5, %v2006_v19 }
 0x106   :  { %2571 = vst [vmem:[#allocation18_spill] sm:$0xff] %v2021_v34  ;;  %v1054_v57 = vadd.f32 1.0, %v2015_v44  ;;  %v783_v47 = vmax.f32 %v781_v23, %v782_v2  ;;  %v642_v59 = vmul.f32 %v1578_v48, %v444_v17  ;;  %v1042_v63 = vand.u32 2147483647, %v2006_v19  ;;  %v497_v17 = vpop.f32.mrf.mxu3 }
 0x107   :  { %2572 = vst [vmem:[#allocation19_spill] sm:$0xff] %v2023_v45  ;;  %1621 = vlog2.f32 %v1045_v62  ;;  %v643_v11 = vmul.f32 %v1578_v48, %v493_v39  ;;  %v786_v58 = vmax.f32 %v784_v42, %v785_v53  ;;  %v1048_v7 = vmul.f32 -0.5, %v909_v43 }
 0x108   :  { %2573 = vst [vmem:[#allocation20_spill] sm:$0xff] %v2026_v54  ;;  %v2040_v14 = vmax.f32 %v783_v47, 0.0  ;;  %v1057_v61 = vmul.f32 -0.5, %v2015_v44  ;;  %v641_v15 = vmul.f32 %v1578_v48, %v395_v60  ;;  %v645_v0 = vmul.f32 %v1988_v50, %v397_v55 }
 0x109   :  { %v787_v5 = vrot.slane %v786_v58, 2  ;;  %v1040_v30 = vadd.f32 1.0, %v1039_v56  ;;  %1623 = vlog2.f32 %v1054_v57  ;;  %vm2046_vm13 = vcmp.lt.f32.partialorder %v1042_v63, 0.0004427343 }
 0x10a   :  { %v1063_v20 = vadd.f32 1.0, %v2040_v14  ;;  %v1066_v25 = vmul.f32 -0.5, %v2040_v14  ;;  %v791_v29 = vmax.f32 %v641_v15, %v645_v0  ;;  %v446_v23 = vadd.f32 %v445_v10, %v1802_v24 }
 0x10b   :  { %v1620_v40 = vpop.eup %1619  ;;  %v788_v27 = vmax.f32 %v786_v58, %v787_v5  ;;  %v1049_v32 = vadd.f32 1.0, %v1048_v7  ;;  %v1051_v48 = vand.u32 2147483647, %v909_v43  ;;  %v495_v60 = vadd.f32 %v494_v38, %v1805_v26 }
 0x10c   :  { %1625 = vlog2.f32 %v1063_v20  ;;  %v1058_v2 = vadd.f32 1.0, %v1057_v61  ;;  %v792_v53 = vrot.slane %v791_v29, 4  ;;  %v646_v62 = vmul.f32 %v1988_v50, %v446_v23 }
 0x10d   :  { %v1622_v42 = vpop.eup %1621  ;;  %v789_v39 = vrot.slane %v788_v27, 1  ;;  %v2053_v55 = vmul.f32 0.6931472, %v1620_v40  ;;  %v2056_v56 = vmul.f32 %v1040_v30, %v2006_v19  ;;  %v1067_v57 = vadd.f32 1.0, %v1066_v25  ;;  %v1582_v19 = vpop.permute.xlu2 %1581 }
 0x10e   :  { %v647_v10 = vmul.f32 %v1988_v50, %v495_v60  ;;  %v2059_v47 = vmul.f32 0.6931472, %v1622_v42  ;;  %v793_v58 = vmax.f32 %v791_v29, %v792_v53  ;;  %v798_v38 = vmax.f32 %v642_v59, %v646_v62  ;;  %v352_v40 = vpop.f32.mrf.mxu0  ;;  %v401_v59 = vpop.f32.mrf.mxu1 }
 0x10f   :  { %2576 = vst [vmem:[#allocation21_spill] sm:$0xff] %v2053_v55  ;;  %v790_v63 = vmax.f32 %v788_v27, %v789_v39  ;;  %v1624_v7 = vpop.eup %1623  ;;  %v2061_v5 = vmul.f32 %v1049_v32, %v909_v43  ;;  %vm2063_vm14 = vcmp.lt.f32.partialorder %v1051_v48, 0.0004427343  ;;  %v2579_v61 = vmov 0  ;;  %v450_v42 = vpop.f32.mrf.mxu2 }
 0x110   :  { %2577 = vst [vmem:[#allocation22_spill] sm:$0xff] %v2059_v47  ;;  %v2580_v61 = vsel %vm2063_vm14, 4294967295, %v2579_v61  ;;  %v1060_v15 = vand.u32 2147483647, %v2015_v44  ;;  %v805_v0 = vmax.f32 %v643_v11, %v647_v10  ;;  %v2069_v30 = vmul.f32 %v1058_v2, %v2015_v44 }
 0x111   :  { %2578 = vst [vmem:[#allocation23_spill] sm:$0xff] %v2061_v5  ;;  %v1069_v50 = vand.u32 2147483647, %v2040_v14  ;;  %v794_v20 = vrot.slane %v793_v58, 2  ;;  %v799_v25 = vrot.slane %v798_v38, 4  ;;  %v2077_v29 = vmul.f32 %v1067_v57, %v2040_v14 }
 0x112   :  { %2581 = vst [vmem:[#allocation24_spill] sm:$0xff] %v2580_v61  ;;  %v1626_v27 = vpop.eup %1625  ;;  %v2079_v11 = vmax.f32 %v790_v63, 0.0  ;;  %v806_v23 = vrot.slane %v805_v0, 4  ;;  %v2085_v32 = vmul.f32 0.6931472, %v1624_v7  ;;  %v351_v48 = vadd.f32 %v350_v4, %v1795_v12 }
 0x113   :  { %2582 = vst [vmem:[#allocation25_spill] sm:$0xff] %v2069_v30  ;;  %v1583_v60 = vunpack.i.l.bf16 %v1582_v19  ;;  %v795_v2 = vmax.f32 %v793_v58, %v794_v20  ;;  %v800_v39 = vmax.f32 %v798_v38, %v799_v25  ;;  %v400_v14 = vadd.f32 %v399_v6, %v1797_v13  ;;  %v499_v38 = vpop.f32.mrf.mxu3 }
 0x114   :  { %2583 = vst [vmem:[#allocation26_spill] sm:$0xff] %v2077_v29  ;;  %v807_v53 = vmax.f32 %v805_v0, %v806_v23  ;;  %vm2089_vm15 = vcmp.lt.f32.partialorder %v1060_v15, 0.0004427343  ;;  %v2585_v62 = vmov 0  ;;  %v2093_v57 = vmul.f32 0.6931472, %v1626_v27 }
 0x115   :  { %2584 = vst [vmem:[#allocation27_spill] sm:$0xff] %v2085_v32  ;;  %v2586_v62 = vsel %vm2089_vm15, 4294967295, %v2585_v62  ;;  %v1584_v10 = vunpack.i.h.bf16 %v1582_v19  ;;  %v449_v63 = vadd.f32 %v448_v1, %v1802_v24  ;;  %v498_v7 = vadd.f32 %v497_v17, %v1805_v26 }
 0x116   :  { %2587 = vst [vmem:[#allocation28_spill] sm:$0xff] %v2586_v62  ;;  %v1072_v4 = vadd.f32 1.0, %v2079_v11  ;;  %v796_v52 = vrot.slane %v795_v2, 1  ;;  %v801_v44 = vrot.slane %v800_v39, 2  ;;  %v808_v58 = vrot.slane %v807_v53, 2 }
 0x117   :  { %2588 = vst [vmem:[#allocation29_spill] sm:$0xff] %v2093_v57  ;;  %vm2098_vm0 = vcmp.lt.f32.partialorder %v1069_v50, 0.0004427343  ;;  %v2589_v0 = vmov 0  ;;  %v1075_v6 = vmul.f32 -0.5, %v2079_v11  ;;  %v353_v15 = vadd.f32 %v352_v40, %v1795_v12 }
 0x118   :  { %v2590_v0 = vsel %vm2098_vm0, 4294967295, %v2589_v0  ;;  %v648_v20 = vmul.f32 %v1583_v60, %v351_v48  ;;  %v402_v19 = vadd.f32 %v401_v59, %v1797_v13  ;;  %v797_v1 = vmax.f32 %v795_v2, %v796_v52  ;;  %v355_v59 = vpop.f32.mrf.mxu0  ;;  %v404_v52 = vpop.f32.mrf.mxu1 }
 0x119   :  { %2591 = vst [vmem:[#allocation30_spill] sm:$0xff] %v2590_v0  ;;  %v802_v25 = vmax.f32 %v800_v39, %v801_v44  ;;  %v809_v17 = vmax.f32 %v807_v53, %v808_v58  ;;  %v649_v27 = vmul.f32 %v1583_v60, %v400_v14  ;;  %v652_v23 = vmul.f32 %v1584_v10, %v353_v15 }
 0x11a   :  { %v653_v28 = vmul.f32 %v1584_v10, %v402_v19  ;;  %v451_v9 = vadd.f32 %v450_v42, %v1802_v24  ;;  %v500_v50 = vadd.f32 %v499_v38, %v1805_v26  ;;  %1627 = vlog2.f32 %v1072_v4  ;;  %v453_v38 = vpop.f32.mrf.mxu2 }
 0x11b   :  { %v2107_v43 = vmax.f32 %v797_v1, 0.0  ;;  %v803_v37 = vrot.slane %v802_v25, 1  ;;  %v810_v45 = vrot.slane %v809_v17, 1  ;;  %v650_v54 = vmul.f32 %v1583_v60, %v449_v63 }
 0x11c   :  { %v812_v40 = vmax.f32 %v648_v20, %v652_v23  ;;  %v819_v48 = vmax.f32 %v649_v27, %v653_v28  ;;  %v654_v31 = vmul.f32 %v1584_v10, %v451_v9  ;;  %v1076_v44 = vadd.f32 1.0, %v1075_v6 }
 0x11d   :  { %v1081_v2 = vadd.f32 1.0, %v2107_v43  ;;  %v1084_v39 = vmul.f32 -0.5, %v2107_v43  ;;  %v655_v53 = vmul.f32 %v1584_v10, %v500_v50  ;;  %v804_v42 = vmax.f32 %v802_v25, %v803_v37 }
 0x11e   :  { %v811_v14 = vmax.f32 %v809_v17, %v810_v45  ;;  %v813_v58 = vrot.slane %v812_v40, 4  ;;  %v820_v4 = vrot.slane %v819_v48, 4  ;;  %v651_v9 = vmul.f32 %v1583_v60, %v498_v7  ;;  %v502_v17 = vpop.f32.mrf.mxu3 }
 0x11f   :  { %1629 = vlog2.f32 %v1081_v2  ;;  %v826_v28 = vmax.f32 %v650_v54, %v654_v31  ;;  %v2115_v15 = vmax.f32 %v804_v42, 0.0  ;;  %v1085_v1 = vadd.f32 1.0, %v1084_v39 }
 0x120   :  { %v2117_v6 = vmax.f32 %v811_v14, 0.0  ;;  %v814_v20 = vmax.f32 %v812_v40, %v813_v58  ;;  %v821_v19 = vmax.f32 %v819_v48, %v820_v4  ;;  %v1628_v10 = vpop.eup %1627  ;;  %v2125_v60 = vmul.f32 %v1076_v44, %v2079_v11  ;;  %v357_v45 = vpop.f32.mrf.mxu0 }
 0x121   :  { %v827_v25 = vrot.slane %v826_v28, 4  ;;  %v1090_v31 = vadd.f32 1.0, %v2115_v15  ;;  %v1093_v54 = vmul.f32 -0.5, %v2115_v15  ;;  %v833_v7 = vmax.f32 %v651_v9, %v655_v53  ;;  %v1587_v9 = vpop.permute.xlu0 %1586  ;;  %v406_v2 = vpop.f32.mrf.mxu1 }
 0x122   :  { %v1099_v27 = vadd.f32 1.0, %v2117_v6  ;;  %v1102_v23 = vmul.f32 -0.5, %v2117_v6  ;;  %v815_v50 = vrot.slane %v814_v20, 2  ;;  %v822_v40 = vrot.slane %v821_v19, 2 }
 0x123   :  { %v2131_v48 = vmul.f32 0.6931472, %v1628_v10  ;;  %v828_v39 = vmax.f32 %v826_v28, %v827_v25  ;;  %v356_v42 = vadd.f32 %v355_v59, %v1795_v12  ;;  %v2136_v14 = vmul.f32 %v1085_v1, %v2107_v43 }
 0x124   :  { %v816_v53 = vmax.f32 %v814_v20, %v815_v50  ;;  %v2140_v4 = vadd.f32 %v404_v52, %v1797_v13  ;;  %1631 = vlog2.f32 %v1090_v31  ;;  %v1094_v37 = vadd.f32 1.0, %v1093_v54  ;;  %v2143_v20 = vpop.f32.mrf.mxu2 }
 0x125   :  { %v1630_v44 = vpop.eup %1629  ;;  %v823_v10 = vmax.f32 %v821_v19, %v822_v40  ;;  %v829_v63 = vrot.slane %v828_v39, 2  ;;  %1633 = vlog2.f32 %v1099_v27  ;;  %v1103_v28 = vadd.f32 1.0, %v1102_v23 }
 0x126   :  { %v817_v59 = vrot.slane %v816_v53, 1  ;;  %v834_v25 = vrot.slane %v833_v7, 4  ;;  %v1588_v29 = vunpack.i.l.bf16 %v1587_v9  ;;  %v454_v58 = vadd.f32 %v453_v38, %v1802_v24 }
 0x127   :  { %v824_v57 = vrot.slane %v823_v10, 1  ;;  %v830_v1 = vmax.f32 %v828_v39, %v829_v63  ;;  %v2145_v52 = vmul.f32 0.6931472, %v1630_v44  ;;  %v2148_v0 = vunpack.i.h.bf16 %v1587_v9  ;;  %v504_v44 = vpop.f32.mrf.mxu3 }
 0x128   :  { %v818_v54 = vmax.f32 %v816_v53, %v817_v59  ;;  %v835_v19 = vmax.f32 %v833_v7, %v834_v25  ;;  %v358_v27 = vadd.f32 %v357_v45, %v1795_v12  ;;  %v2152_v23 = vmul.f32 %v1094_v37, %v2115_v15 }
 0x129   :  { %v825_v50 = vmax.f32 %v823_v10, %v824_v57  ;;  %v831_v40 = vrot.slane %v830_v1, 1  ;;  %v2155_v63 = vmul.f32 %v1103_v28, %v2117_v6  ;;  %v2161_v57 = vmul.f32 %v1588_v29, %v454_v58 }
 0x12a   :  { %v2157_v38 = vmax.f32 %v818_v54, 0.0  ;;  %v836_v39 = vrot.slane %v835_v19, 2  ;;  %v1632_v16 = vpop.eup %1631  ;;  %v503_v53 = vadd.f32 %v502_v17, %v1805_v26  ;;  %v656_v28 = vmul.f32 %v1588_v29, %v356_v42  ;;  %v409_v42 = vpop.f32.mrf.mxu1 }
 0x12b   :  { %v2159_v31 = vmax.f32 %v825_v50, 0.0  ;;  %v832_v7 = vmax.f32 %v830_v1, %v831_v40  ;;  %v1634_v9 = vpop.eup %1633  ;;  %v660_v50 = vmul.f32 %v2148_v0, %v358_v27  ;;  %v2171_v1 = vmul.f32 0.6931472, %v1632_v16 }
 0x12c   :  { %v1108_v45 = vadd.f32 1.0, %v2157_v38  ;;  %v1111_v37 = vmul.f32 -0.5, %v2157_v38  ;;  %v837_v10 = vmax.f32 %v835_v19, %v836_v39  ;;  %v659_v30 = vmul.f32 %v1588_v29, %v503_v53  ;;  %v360_v19 = vpop.f32.mrf.mxu0 }
 0x12d   :  { %v1117_v59 = vadd.f32 1.0, %v2159_v31  ;;  %v1120_v25 = vmul.f32 -0.5, %v2159_v31  ;;  %v2168_v54 = vmax.f32 %v832_v7, 0.0  ;;  %v2174_v39 = vmul.f32 0.6931472, %v1634_v9 }
 0x12e   :  { %1635 = vlog2.f32 %v1108_v45  ;;  %v1112_v58 = vadd.f32 1.0, %v1111_v37  ;;  %v838_v17 = vrot.slane %v837_v10, 1  ;;  %v840_v27 = vmax.f32 %v656_v28, %v660_v50  ;;  %v1592_v37 = vpop.permute.xlu1 %1591 }
 0x12f   :  { %1637 = vlog2.f32 %v1117_v59  ;;  %v1121_v40 = vadd.f32 1.0, %v1120_v25  ;;  %v1126_v32 = vadd.f32 1.0, %v2168_v54  ;;  %v1129_v7 = vmul.f32 -0.5, %v2168_v54  ;;  %v458_v59 = vpop.f32.mrf.mxu2  ;;  %v507_v16 = vpop.f32.mrf.mxu3 }
 0x130   :  { %v839_v47 = vmax.f32 %v837_v10, %v838_v17  ;;  %v407_v45 = vadd.f32 %v406_v2, %v1797_v13  ;;  %v2181_v25 = vmul.f32 %v1112_v58, %v2157_v38  ;;  %v841_v10 = vrot.slane %v840_v27, 4 }
 0x131   :  { %1639 = vlog2.f32 %v1126_v32  ;;  %v1130_v53 = vadd.f32 1.0, %v1129_v7  ;;  %v2187_v62 = vmul.f32 %v1121_v40, %v2159_v31  ;;  %v657_v17 = vmul.f32 %v1588_v29, %v2140_v4 }
 0x132   :  { %v2184_v5 = vmax.f32 %v839_v47, 0.0  ;;  %v661_v32 = vmul.f32 %v2148_v0, %v407_v45  ;;  %v2193_v58 = vunpack.i.h.bf16 %v1592_v37  ;;  %v1593_v7 = vunpack.i.l.bf16 %v1592_v37  ;;  %v411_v46 = vpop.f32.mrf.mxu1 }
 0x133   :  { %v2196_v47 = vmul.f32 %v1130_v53, %v2168_v54  ;;  %v842_v40 = vmax.f32 %v840_v27, %v841_v10  ;;  %v456_v29 = vadd.f32 %v2143_v20, %v1802_v24  ;;  %v505_v51 = vadd.f32 %v504_v44, %v1805_v26 }
 0x134   :  { %v1636_v28 = vpop.eup %1635  ;;  %v1135_v2 = vadd.f32 1.0, %v2184_v5  ;;  %v1138_v50 = vmul.f32 -0.5, %v2184_v5  ;;  %v847_v61 = vmax.f32 %v657_v17, %v661_v32  ;;  %v361_v10 = vadd.f32 %v360_v19, %v1795_v12 }
 0x135   :  { %v1638_v9 = vpop.eup %1637  ;;  %v2200_v4 = vmul.f32 0.6931472, %v1636_v28  ;;  %v843_v18 = vrot.slane %v842_v40, 2  ;;  %v662_v37 = vmul.f32 %v2148_v0, %v456_v29  ;;  %v410_v20 = vadd.f32 %v409_v42, %v1797_v13 }
 0x136   :  { %1641 = vlog2.f32 %v1135_v2  ;;  %v1139_v45 = vadd.f32 1.0, %v1138_v50  ;;  %v848_v41 = vrot.slane %v847_v61, 4  ;;  %v2205_v53 = vmul.f32 0.6931472, %v1638_v9  ;;  %v362_v50 = vpop.f32.mrf.mxu0 }
 0x137   :  { %v1640_v34 = vpop.eup %1639  ;;  %v844_v17 = vmax.f32 %v842_v40, %v843_v18  ;;  %v854_v28 = vmax.f32 %v2161_v57, %v662_v37  ;;  %v663_v2 = vmul.f32 %v2148_v0, %v505_v51  ;;  %v664_v44 = vmul.f32 %v1593_v7, %v361_v10  ;;  %v460_v18 = vpop.f32.mrf.mxu2 }
 0x138   :  { %v2207_v27 = vmul.f32 0.6931472, %v1640_v34  ;;  %v849_v32 = vmax.f32 %v847_v61, %v848_v41  ;;  %v2214_v29 = vmul.f32 %v1139_v45, %v2184_v5  ;;  %v459_v9 = vadd.f32 %v458_v59, %v1802_v24 }
 0x139   :  { %v508_v34 = vadd.f32 %v507_v16, %v1805_v26  ;;  %v845_v35 = vrot.slane %v844_v17, 1  ;;  %v855_v36 = vrot.slane %v854_v28, 4  ;;  %v861_v42 = vmax.f32 %v659_v30, %v663_v2  ;;  %v509_v30 = vpop.f32.mrf.mxu3 }
 0x13a   :  { %v850_v19 = vrot.slane %v849_v32, 2  ;;  %v665_v61 = vmul.f32 %v1593_v7, %v410_v20  ;;  %v666_v57 = vmul.f32 %v1593_v7, %v459_v9  ;;  %v363_v51 = vadd.f32 %v362_v50, %v1795_v12 }
 0x13b   :  { %v412_v0 = vadd.f32 %v411_v46, %v1797_v13  ;;  %v846_v40 = vmax.f32 %v844_v17, %v845_v35  ;;  %v856_v37 = vmax.f32 %v854_v28, %v855_v36  ;;  %v667_v10 = vmul.f32 %v1593_v7, %v508_v34 }
 0x13c   :  { %v1642_v41 = vpop.eup %1641  ;;  %v851_v45 = vmax.f32 %v849_v32, %v850_v19  ;;  %v862_v49 = vrot.slane %v861_v42, 4  ;;  %v668_v59 = vmul.f32 %v2193_v58, %v363_v51  ;;  %v461_v55 = vadd.f32 %v460_v18, %v1802_v24 }
 0x13d   :  { %v669_v16 = vmul.f32 %v2193_v58, %v412_v0  ;;  %v2223_v2 = vmul.f32 0.6931472, %v1642_v41  ;;  %v2225_v20 = vmax.f32 %v846_v40, 0.0  ;;  %v857_v12 = vrot.slane %v856_v37, 2 }
 0x13e   :  { %v852_v9 = vrot.slane %v851_v45, 1  ;;  %v863_v50 = vmax.f32 %v861_v42, %v862_v49  ;;  %v868_v13 = vmax.f32 %v664_v44, %v668_v59  ;;  %v670_v36 = vmul.f32 %v2193_v58, %v461_v55 }
 0x13f   :  { %v875_v35 = vmax.f32 %v665_v61, %v669_v16  ;;  %v2592_v46 = vand.u32 2147483647, %v2079_v11  ;;  %v1144_v24 = vadd.f32 1.0, %v2225_v20  ;;  %v1147_v17 = vmul.f32 -0.5, %v2225_v20 }
 0x140   :  { %v853_v32 = vmax.f32 %v851_v45, %v852_v9  ;;  %v510_v28 = vadd.f32 %v509_v30, %v1805_v26  ;;  %v858_v34 = vmax.f32 %v856_v37, %v857_v12  ;;  %v864_v19 = vrot.slane %v863_v50, 2 }
 0x141   :  { %vm2230_vm1 = vcmp.lt.f32.partialorder %v2592_v46, 0.0004427343  ;;  %v869_v49 = vrot.slane %v868_v13, 4  ;;  %v876_v44 = vrot.slane %v875_v35, 4  ;;  %1643 = vlog2.f32 %v1144_v24 }
 0x142   :  { %v1148_v42 = vadd.f32 1.0, %v1147_v17  ;;  %v2237_v55 = vmax.f32 %v853_v32, 0.0  ;;  %v882_v11 = vmax.f32 %v666_v57, %v670_v36  ;;  %v2595_v18 = vand.u32 2147483647, %v2107_v43 }
 0x143   :  { %v859_v61 = vrot.slane %v858_v34, 1  ;;  %v865_v51 = vmax.f32 %v863_v50, %v864_v19  ;;  %v870_v0 = vmax.f32 %v868_v13, %v869_v49  ;;  %v877_v40 = vmax.f32 %v875_v35, %v876_v44 }
 0x144   :  { %vm2241_vm2 = vcmp.lt.f32.partialorder %v2595_v18, 0.0004427343  ;;  %v2246_v26 = vmul.f32 %v1148_v42, %v2225_v20  ;;  %v1150_v45 = vand.u32 2147483647, %v2225_v20  ;;  %v1153_v37 = vadd.f32 1.0, %v2237_v55 }
 0x145   :  { %v1156_v59 = vmul.f32 -0.5, %v2237_v55  ;;  %v860_v57 = vmax.f32 %v858_v34, %v859_v61  ;;  %v866_v16 = vrot.slane %v865_v51, 1  ;;  %v871_v43 = vrot.slane %v870_v0, 2 }
 0x146   :  { %v878_v30 = vrot.slane %v877_v40, 2  ;;  %v2598_v9 = vand.u32 2147483647, %v2115_v15  ;;  %1645 = vlog2.f32 %v1153_v37  ;;  %v883_v13 = vrot.slane %v882_v11, 4 }
 0x147   :  { %v1157_v50 = vadd.f32 1.0, %v1156_v59  ;;  %v671_v35 = vmul.f32 %v2193_v58, %v510_v28  ;;  %v2601_v36 = vand.u32 2147483647, %v2117_v6  ;;  %v2602_v46 = vmov 0  ;;  %v1644_v34 = vpop.eup %1643 }
 0x148   :  { %vm2253_vm3 = vcmp.lt.f32.partialorder %v2598_v9, 0.0004427343  ;;  %v2264_v24 = vmax.f32 %v860_v57, 0.0  ;;  %v867_v17 = vmax.f32 %v865_v51, %v866_v16  ;;  %v872_v32 = vmax.f32 %v870_v0, %v871_v43 }
 0x149   :  { %vm2260_vm4 = vcmp.lt.f32.partialorder %v2601_v36, 0.0004427343  ;;  %v879_v15 = vmax.f32 %v877_v40, %v878_v30  ;;  %v2267_v19 = vmul.f32 %v1157_v50, %v2237_v55  ;;  %v1159_v49 = vand.u32 2147483647, %v2237_v55 }
 0x14a   :  { %v2603_v46 = vsel %vm2260_vm4, 4294967295, %v2602_v46  ;;  %v884_v44 = vmax.f32 %v882_v11, %v883_v13  ;;  %v889_v42 = vmax.f32 %v667_v10, %v671_v35  ;;  %v2604_v58 = vand.u32 2147483647, %v2157_v38 }
 0x14b   :  { %v2276_v28 = vmul.f32 0.6931472, %v1644_v34  ;;  %v1162_v18 = vadd.f32 1.0, %v2264_v24  ;;  %v1165_v61 = vmul.f32 -0.5, %v2264_v24  ;;  %v2284_v0 = vmax.f32 %v867_v17, 0.0 }
 0x14c   :  { %vm2272_vm5 = vcmp.lt.f32.partialorder %v2604_v58, 0.0004427343  ;;  %v873_v10 = vrot.slane %v872_v32, 1  ;;  %v880_v11 = vrot.slane %v879_v15, 1  ;;  %v885_v38 = vrot.slane %v884_v44, 2  ;;  %v1646_v9 = vpop.eup %1645 }
 0x14d   :  { %v2607_v40 = vand.u32 2147483647, %v2159_v31  ;;  %v2610_v59 = vand.u32 2147483647, %v2168_v54  ;;  %1647 = vlog2.f32 %v1162_v18  ;;  %v1166_v16 = vadd.f32 1.0, %v1165_v61 }
 0x14e   :  { %v1168_v43 = vand.u32 2147483647, %v2264_v24  ;;  %v890_v30 = vrot.slane %v889_v42, 4  ;;  %v2613_v50 = vand.u32 2147483647, %v2184_v5  ;;  %v1171_v13 = vadd.f32 1.0, %v2284_v0 }
 0x14f   :  { %vm2288_vm6 = vcmp.lt.f32.partialorder %v2607_v40, 0.0004427343  ;;  %vm2294_vm7 = vcmp.lt.f32.partialorder %v2610_v59, 0.0004427343  ;;  %v1174_v54 = vmul.f32 -0.5, %v2284_v0  ;;  %v874_v35 = vmax.f32 %v872_v32, %v873_v10 }
 0x150   :  { %vm2301_vm8 = vcmp.lt.f32.partialorder %v2613_v50, 0.0004427343  ;;  %v2311_v17 = vmul.f32 0.6931472, %v1646_v9  ;;  %v1177_v34 = vand.u32 2147483647, %v2284_v0  ;;  %v881_v58 = vmax.f32 %v879_v15, %v880_v11 }
 0x151   :  { %v886_v5 = vmax.f32 %v884_v44, %v885_v38  ;;  %1649 = vlog2.f32 %v1171_v13  ;;  %v1175_v18 = vadd.f32 1.0, %v1174_v54  ;;  %v924_v61 = vmax.f32 %v874_v35, 0.0 }
 0x152   :  { %v891_v40 = vmax.f32 %v889_v42, %v890_v30  ;;  %v2315_v59 = vmul.f32 %v1166_v16, %v2264_v24  ;;  %v925_v50 = vmax.f32 %v881_v58, 0.0  ;;  %v1116_v13 = vsel %vm2272_vm5, %v2181_v25, %v2200_v4 }
 0x153   :  { %v887_v32 = vrot.slane %v886_v5, 1  ;;  %v1180_v9 = vadd.f32 1.0, %v924_v61  ;;  %v1183_v36 = vmul.f32 -0.5, %v924_v61  ;;  %v1648_v44 = vpop.eup %1647  ;;  %v2326_v42 = vmul.f32 %v1175_v18, %v2284_v0 }
 0x154   :  { %v892_v51 = vrot.slane %v891_v40, 2  ;;  %v1189_v24 = vadd.f32 1.0, %v925_v50  ;;  %v1192_v11 = vmul.f32 -0.5, %v925_v50  ;;  %v2332_v54 = vmul.f32 0.6931472, %v1648_v44 }
 0x155   :  { %v888_v38 = vmax.f32 %v886_v5, %v887_v32  ;;  %1651 = vlog2.f32 %v1180_v9  ;;  %v1184_v16 = vadd.f32 1.0, %v1183_v36  ;;  %v1125_v5 = vsel %vm2288_vm6, %v2187_v62, %v2205_v53  ;;  %v2631_v32 = vld [vmem:[#allocation21_spill] sm:$0xff] }
 0x156   :  { %v893_v30 = vmax.f32 %v891_v40, %v892_v51  ;;  %1653 = vlog2.f32 %v1189_v24  ;;  %v1193_v35 = vadd.f32 1.0, %v1192_v11  ;;  %v1134_v51 = vsel %vm2294_vm7, %v2196_v47, %v2207_v27  ;;  %v2637_v24 = vld [vmem:[#allocation14_spill] sm:$0xff] }
 0x157   :  { %v926_v58 = vmax.f32 %v888_v38, 0.0  ;;  %v1650_v15 = vpop.eup %1649  ;;  %v1185_v10 = vmul.f32 %v1184_v16, %v924_v61  ;;  %v1143_v36 = vsel %vm2301_vm8, %v2214_v29, %v2223_v2  ;;  %vm2352_vm5 = vcmp.lt.f32.partialorder %v1150_v45, 0.0004427343 }
 0x158   :  { %v894_v0 = vrot.slane %v893_v30, 1  ;;  %v2342_v6 = vmul.f32 0.6931472, %v1650_v15  ;;  %v2348_v18 = vmul.f32 %v1193_v35, %v925_v50  ;;  %vm2358_vm4 = vcmp.lt.f32.partialorder %v1159_v49, 0.0004427343 }
 0x159   :  { %v1198_v25 = vadd.f32 1.0, %v926_v58  ;;  %v1201_v4 = vmul.f32 -0.5, %v926_v58  ;;  %v1152_v44 = vsel %vm2352_vm5, %v2246_v26, %v2276_v28  ;;  %vm2366_vm8 = vcmp.lt.f32.partialorder %v1168_v43, 0.0004427343 }
 0x15a   :  { %v895_v40 = vmax.f32 %v893_v30, %v894_v0  ;;  %v1161_v55 = vsel %vm2358_vm4, %v2267_v19, %v2311_v17  ;;  %v1170_v49 = vsel %vm2366_vm8, %v2315_v59, %v2332_v54  ;;  %v1186_v11 = vand.u32 2147483647, %v924_v61  ;;  %v2652_v61 = vld [vmem:[#allocation27_spill] sm:$0xff] }
 0x15b   :  { %1655 = vlog2.f32 %v1198_v25  ;;  %v1202_v15 = vadd.f32 1.0, %v1201_v4  ;;  %v1652_v20 = vpop.eup %1651  ;;  %vm2378_vm5 = vcmp.lt.f32.partialorder %v1177_v34, 0.0004427343  ;;  %v1195_v43 = vand.u32 2147483647, %v925_v50 }
 0x15c   :  { %v927_v45 = vmax.f32 %v895_v40, 0.0  ;;  %v1654_v38 = vpop.eup %1653  ;;  %v1182_v28 = vmul.f32 0.6931472, %v1652_v20  ;;  %vm2382_vm7 = vcmp.lt.f32.partialorder %v1186_v11, 0.0004427343  ;;  %v1179_v17 = vsel %vm2378_vm5, %v2326_v42, %v2342_v6  ;;  %v2643_v11 = vld [vmem:[#allocation17_spill] sm:$0xff] }
 0x15d   :  { %v1203_v16 = vmul.f32 %v1202_v15, %v926_v58  ;;  %v1191_v19 = vmul.f32 0.6931472, %v1654_v38  ;;  %vm2392_vm4 = vcmp.lt.f32.partialorder %v1195_v43, 0.0004427343  ;;  %v1204_v59 = vand.u32 2147483647, %v926_v58 }
 0x15e   :  { %v1207_v30 = vadd.f32 1.0, %v927_v45  ;;  %v1210_v35 = vmul.f32 -0.5, %v927_v45  ;;  %v1188_v34 = vsel %vm2382_vm7, %v1185_v10, %v1182_v28  ;;  %v1213_v54 = vand.u32 2147483647, %v927_v45  ;;  %v2636_v15 = vld [vmem:[#allocation12_spill] sm:$0xff]  ;;  %v2648_v43 = vld [vmem:[#allocation22_spill] sm:$0xff] }
 0x15f   :  { %vm2539_vm8 = vcmask 1042434   ;;  %v1197_v4 = vsel %vm2392_vm4, %v2348_v18, %v1191_v19  ;;  %vm2399_vm6 = vcmp.lt.f32.partialorder %v1204_v59, 0.0004427343  ;;  %v2630_v10 = vsel %vm1972_vm9, %v1967_v8, %v1964_v21  ;;  %v2651_v19 = vld [vmem:[#allocation25_spill] sm:$0xff] }
 0x160   :  { %1657 = vlog2.f32 %v1207_v30  ;;  %v1211_v50 = vadd.f32 1.0, %v1210_v35  ;;  %v1251_v42 = vsel %vm2539_vm8, %v2630_v10, %v1913_v3  ;;  %vm1252_vm7 = vcmask 1043459   ;;  %v2656_v10 = vld [vmem:[#allocation20_spill] sm:$0xff] }
 0x161   :  { %v1656_v25 = vpop.eup %1655  ;;  %v2632_v18 = vsel %vm2046_vm13, %v2056_v56, %v2631_v32  ;;  %vm1254_vm5 = vcmask 1044484   ;;  %v2633_v33 = vsel %vm2230_vm1, %v2125_v60, %v2131_v48  ;;  %vm1256_vm9 = vcmask 1045509   ;;  %v2642_v48 = vld [vmem:[#allocation18_spill] sm:$0xff] }
 0x162   :  { %v1212_v58 = vmul.f32 %v1211_v50, %v927_v45  ;;  %v1200_v6 = vmul.f32 0.6931472, %v1656_v25  ;;  %v1253_v9 = vsel %vm1252_vm7, %v2632_v18, %v1251_v42  ;;  %vm1258_vm4 = vcmask 1046534   ;;  %v2640_v45 = vld [vmem:[#allocation10_spill] sm:$0xff]  ;;  %v2654_v25 = vld [vmem:[#allocation11_spill] sm:$0xff] }
 0x163   :  { %v1255_v21 = vsel %vm1254_vm5, %v2633_v33, %v1253_v9  ;;  %vm1260_vm8 = vcmask 1047559   ;;  %v2638_v20 = vsel %vm1978_vm10, %v2636_v15, %v2637_v24  ;;  %vm2639_vm13 = vcmask 1042434   ;;  %v2657_v42 = vld [vmem:[#allocation19_spill] sm:$0xff]  ;;  %v2663_v56 = vld [vmem:[#allocation26_spill] sm:$0xff]  ;;  %v2664_v15 = vld [vmem:[#allocation29_spill] sm:$0xff] }
 0x164   :  { %v1206_v3 = vsel %vm2399_vm6, %v1203_v16, %v1200_v6  ;;  %v1257_v8 = vsel %vm1256_vm9, %v1116_v13, %v1255_v21  ;;  %v1263_v7 = vsel %vm2639_vm13, %v2638_v20, %v2634_v22  ;;  %v2644_v38 = vsel %vm2002_vm11, %v2642_v48, %v2643_v11  ;;  %vm2645_vm1 = vmmov %vm2639_vm13  ;;  %v2647_v13 = vld [vmem:[#allocation23_spill] sm:$0xff] }
 0x165   :  { %v1270_v26 = vsel %vm2645_vm1, %v2644_v38, %v2640_v45  ;;  %v1259_v16 = vsel %vm1258_vm4, %v1152_v44, %v1257_v8  ;;  %v2649_v30 = vsel %vm2063_vm14, %v2647_v13, %v2648_v43  ;;  %v2653_v59 = vsel %vm2089_vm15, %v2651_v19, %v2652_v61  ;;  %vm2659_vm10 = vmmov %vm2645_vm1 }
 0x166   :  { %v1264_v35 = vsel %vm1252_vm7, %v2649_v30, %v1263_v7  ;;  %v1271_v50 = vsel %vm1252_vm7, %v2653_v59, %v1270_v26  ;;  %v2658_v44 = vsel %vm2009_vm12, %v2656_v10, %v2657_v42  ;;  %v1658_v32 = vpop.eup %1657  ;;  %v1261_v18 = vsel %vm1260_vm8, %v1188_v34, %v1259_v16 }
 0x167   :  { %v1277_v6 = vsel %vm2659_vm10, %v2658_v44, %v2654_v25  ;;  %v2660_v9 = vsel %vm2241_vm2, %v2136_v14, %v2145_v52  ;;  %v2661_v21 = vsel %vm2253_vm3, %v2152_v23, %v2171_v1  ;;  %v2665_v24 = vsel %vm2098_vm0, %v2663_v56, %v2664_v15  ;;  %1287 = vst [vmem:[#allocation6] sm:$0xff] %v1261_v18 }
 0x168   :  { %v1265_v33 = vsel %vm1254_vm5, %v2660_v9, %v1264_v35  ;;  %v1272_v8 = vsel %vm1254_vm5, %v2661_v21, %v1271_v50  ;;  %v1278_v34 = vsel %vm1252_vm7, %v2665_v24, %v1277_v6  ;;  %v1209_v41 = vmul.f32 0.6931472, %v1658_v32 }
 0x169   :  { %v1266_v14 = vsel %vm1256_vm9, %v1125_v5, %v1265_v33  ;;  %v1273_v52 = vsel %vm1256_vm9, %v1134_v51, %v1272_v8  ;;  %vm2668_vm14 = vnez %v2603_v46  ;;  %vm1214_vm15 = vcmp.lt.f32.partialorder %v1213_v54, 0.0004427343 }
 0x16a   :  { %v2669_v23 = vsel %vm2668_vm14, %v2155_v63, %v2174_v39  ;;  %v1267_v62 = vsel %vm1258_vm4, %v1161_v55, %v1266_v14  ;;  %v1274_v47 = vsel %vm1258_vm4, %v1170_v49, %v1273_v52  ;;  %v1215_v39 = vsel %vm1214_vm15, %v1212_v58, %v1209_v41 }
 0x16b   :  { %v1279_v1 = vsel %vm1254_vm5, %v2669_v23, %v1278_v34  ;;  %v1268_v53 = vsel %vm1260_vm8, %v1197_v4, %v1267_v62  ;;  %v1275_v27 = vsel %vm1260_vm8, %v1206_v3, %v1274_v47 }
 0x16c   :  { %v1280_v63 = vsel %vm1256_vm9, %v1143_v36, %v1279_v1  ;;  %1288 = vst [vmem:[#allocation6 + $0x8] sm:$0xff] %v1268_v53 }
 0x16d   :  { %v1281_v12 = vsel %vm1258_vm4, %v1179_v17, %v1280_v63  ;;  %1289 = vst [vmem:[#allocation6 + $0x10] sm:$0xff] %v1275_v27 }
 0x16e   :  { %v1282_v46 = vsel %vm1260_vm8, %v1215_v39, %v1281_v12 }
 0x16f   :  { %1290 = vst [vmem:[#allocation6 + $0x18] sm:$0xff] %v1282_v46 }
 0x170   :  { %1301 = dma.vmem_to_hbm [thread:$0]  %s1297_s2, 512, %s1299_s29, [#allocation5]  }
 0x171   :  { %1709 = dma.done.wait [#allocation5], 512  }
 0x172   :  { %1710 = vsyncadd [#allocation5], 4294966784 }
 0x173   :  { %1306 = vsyncpa [#allocation4], 1 }
 0x174   :  { %1307 = vsyncpa [#allocation5], 1 }

</bundles_post_ra>
